<compile_context>
chip_gen: v6e
topology: v6e:2x2x1
jax: 0.10.0
libtpu: 0.0.40
codegen_flags: <defaults>
</compile_context>

<pallas_src>
import functools

import jax
import jax.numpy as jnp
import numpy as np
from jax import lax
from jax.experimental import pallas as pl
from jax.experimental.pallas import tpu as pltpu


# ---------------------------------------------------------------------------
# Pallas kernels
# ---------------------------------------------------------------------------
def _conv_mm_kernel(w_ref, p_ref, s_ref, b_ref, *rest, relu, has_skip):
    """One (C_out, tm) output tile: relu?((W @ patches^T)*scale + bias [+ skip])."""
    if has_skip:
        skip_ref, o_ref = rest
    else:
        (o_ref,) = rest
    acc = jnp.dot(w_ref[...], p_ref[...], preferred_element_type=jnp.float32)
    out = acc * s_ref[...] + b_ref[...]          # folded BN, f32 epilogue
    if has_skip:
        out = out + skip_ref[...]                # fused residual add
    if relu:
        out = jnp.maximum(out, 0.0)
    o_ref[...] = out


def pallas_conv_mm(wmat, patches_t, scale, bias, *, skip=None, relu):
    """Transposed conv-as-matmul with fused BN / residual / ReLU epilogue.

    wmat:      (C_out, K)  bf16
    patches_t: (K, M)      bf16,  M = N*oh*ow  (lane axis -> lane-dense stores)
    scale/bias:(C_out, 1)  f32
    skip:      (C_out, M)  f32 or None
    """
    cout, K = wmat.shape
    K2, M = patches_t.shape
    assert K == K2
    tm = min(256, M)
    assert M % tm == 0, (M, tm)
    has_skip = skip is not None

    in_specs = [
        pl.BlockSpec((cout, K), lambda i: (0, 0)),   # weights: resident across grid
        pl.BlockSpec((K, tm), lambda i: (0, i)),     # patches^T tile
        pl.BlockSpec((cout, 1), lambda i: (0, 0)),   # folded-BN scale
        pl.BlockSpec((cout, 1), lambda i: (0, 0)),   # folded-BN bias
    ]
    args = [wmat, patches_t, scale, bias]
    if has_skip:
        in_specs.append(pl.BlockSpec((cout, tm), lambda i: (0, i)))
        args.append(skip)

    kern = functools.partial(_conv_mm_kernel, relu=relu, has_skip=has_skip)
    return pl.pallas_call(
        kern,
        out_shape=jax.ShapeDtypeStruct((cout, M), jnp.float32),
        grid=(M // tm,),
        in_specs=in_specs,
        out_specs=pl.BlockSpec((cout, tm), lambda i: (0, i)),
        compiler_params=pltpu.CompilerParams(
            dimension_semantics=("parallel",)),      # shards M across TCs on v7x
    )(*args)


def _head_kernel(h_ref, w1_ref, b1_ref, w2_ref, b2_ref, o_ref):
    """Fused global-avg-pool + Linear(32->64) + ReLU + Linear(64->10)."""
    feat = jnp.mean(h_ref[...], axis=2)                        # (C, N), f32
    z = jnp.dot(w1_ref[...], feat.astype(jnp.bfloat16),
                preferred_element_type=jnp.float32) + b1_ref[...]
    z = jnp.maximum(z, 0.0)
    o_ref[...] = jnp.dot(w2_ref[...], z.astype(jnp.bfloat16),
                         preferred_element_type=jnp.float32) + b2_ref[...]


def pallas_head(h_cm, w1, b1, w2, b2):
    """h_cm: (C, N, H, W) -> logits (N, num_classes) in a single pallas_call."""
    C, N, H, W = h_cm.shape
    out_t = pl.pallas_call(
        _head_kernel,
        out_shape=jax.ShapeDtypeStruct((w2.shape[0], N), jnp.float32),
    )(h_cm.reshape(C, N, H * W),
      w1.astype(jnp.bfloat16), b1.reshape(-1, 1).astype(jnp.float32),
      w2.astype(jnp.bfloat16), b2.reshape(-1, 1).astype(jnp.float32))
    return out_t.T


# ---------------------------------------------------------------------------
# Glue (plain JAX): BN folding, C-major im2col, conv wrapper
# ---------------------------------------------------------------------------
def _bn_fold(bn, eps=1e-5):
    scale = bn["gamma"] / jnp.sqrt(bn["var"] + eps)
    bias = bn["beta"] - bn["mean"] * scale
    return scale, bias


def _im2col_t(x_cm, kh, kw, stride, padding):
    """x_cm (C,N,H,W) -> patches^T (kh*kw*C, N*oh*ow); C-major, no transposes."""
    C, N, H, W = x_cm.shape
    xp = jnp.pad(x_cm, ((0, 0), (0, 0), (padding, padding), (padding, padding)))
    oh = (H + 2 * padding - kh) // stride + 1
    ow = (W + 2 * padding - kw) // stride + 1
    rows = []
    for i in range(kh):
        for j in range(kw):
            rows.append(xp[:, :, i:i + stride * oh:stride, j:j + stride * ow:stride])
    pt = jnp.stack(rows, axis=0)                       # (kh*kw, C, N, oh, ow)
    return pt.reshape(kh * kw * C, N * oh * ow), oh, ow


def conv_bn_act(x_cm, w_oihw, bn, *, stride, padding, relu, skip=None):
    """Conv + folded-BN (+ residual) (+ ReLU) on C-major activations."""
    scale, bias = _bn_fold(bn)
    cout, cin, kh, kw = w_oihw.shape
    C, N = x_cm.shape[0], x_cm.shape[1]
    if C > cin:  # activations carry zero-padded input channels (stem: 3 -> 8)
        w_oihw = jnp.pad(w_oihw, ((0, 0), (0, C - cin), (0, 0), (0, 0)))

    if kh == 1 and kw == 1 and padding == 0:
        # 1x1 downsample: strided spatial subsample, no im2col at all.
        xs = x_cm[:, :, ::stride, ::stride]
        oh, ow = xs.shape[2], xs.shape[3]
        pt = xs.reshape(C, N * oh * ow)
        wmat = w_oihw.reshape(cout, C)
    else:
        pt, oh, ow = _im2col_t(x_cm, kh, kw, stride, padding)
        wmat = jnp.transpose(w_oihw, (0, 2, 3, 1)).reshape(cout, kh * kw * C)

    skip_m = None if skip is None else skip.reshape(cout, N * oh * ow)
    y = pallas_conv_mm(wmat.astype(jnp.bfloat16), pt.astype(jnp.bfloat16),
                       scale.reshape(-1, 1).astype(jnp.float32),
                       bias.reshape(-1, 1).astype(jnp.float32),
                       skip=skip_m, relu=relu)
    return y.reshape(cout, N, oh, ow)


# ---------------------------------------------------------------------------
# Deterministic parameter init (shapes from the module instantiation above)
# ---------------------------------------------------------------------------
def init_params(key):
    ks = iter(jax.random.split(key, 48))

    def nrm(shape, std=0.1):
        return std * jax.random.normal(next(ks), shape, dtype=jnp.float32)

    def bn(c):
        return dict(
            gamma=1.0 + 0.1 * jax.random.normal(next(ks), (c,), dtype=jnp.float32),
            beta=0.1 * jax.random.normal(next(ks), (c,), dtype=jnp.float32),
            mean=0.1 * jax.random.normal(next(ks), (c,), dtype=jnp.float32),
            var=jnp.abs(jax.random.normal(next(ks), (c,), dtype=jnp.float32)) + 0.5,
        )

    return {
        "stem_w": nrm((16, 3, 3, 3)),  "stem_bn": bn(16),
        "b1_w1": nrm((16, 16, 3, 3)),  "b1_bn1": bn(16),
        "b1_w2": nrm((16, 16, 3, 3)),  "b1_bn2": bn(16),
        "b2_w1": nrm((32, 16, 3, 3)),  "b2_bn1": bn(32),
        "b2_w2": nrm((32, 32, 3, 3)),  "b2_bn2": bn(32),
        "b2_ws": nrm((32, 16, 1, 1)),  "b2_bns": bn(32),
        "fc1_w": nrm((64, 32)), "fc1_b": nrm((64,)),
        "fc2_w": nrm((10, 64)), "fc2_b": nrm((10,)),
    }


# ---------------------------------------------------------------------------
# Pallas forward pass (C-major activations)
# ---------------------------------------------------------------------------
def custom_resnet_forward(params, x_nchw):
    # NCHW -> C-major (C, N, H, W); pad input channels 3 -> 8 (sublane-friendly K).
    x = jnp.transpose(x_nchw.astype(jnp.float32), (1, 0, 2, 3))
    x = jnp.pad(x, ((0, 8 - x.shape[0]), (0, 0), (0, 0), (0, 0)))

    # --- resnet_base ---
    h = conv_bn_act(x, params["stem_w"], params["stem_bn"],
                    stride=1, padding=1, relu=True)

    o = conv_bn_act(h, params["b1_w1"], params["b1_bn1"],
                    stride=1, padding=1, relu=True)
    h = conv_bn_act(o, params["b1_w2"], params["b1_bn2"],
                    stride=1, padding=1, relu=True, skip=h)          # fused add+ReLU

    sc = conv_bn_act(h, params["b2_ws"], params["b2_bns"],
                     stride=2, padding=0, relu=False)                # 1x1, no im2col
    o = conv_bn_act(h, params["b2_w1"], params["b2_bn1"],
                    stride=2, padding=1, relu=True)
    h = conv_bn_act(o, params["b2_w2"], params["b2_bn2"],
                    stride=1, padding=1, relu=True, skip=sc)         # fused add+ReLU

    # --- global avg pool + additional_layers, one fused kernel ---
    return pallas_head(h, params["fc1_w"], params["fc1_b"],
                       params["fc2_w"], params["fc2_b"])


# ---------------------------------------------------------------------------
# Pure-JAX reference (intentional bf16-with-f32-accumulation comparison)
# ---------------------------------------------------------------------------
def _ref_conv_bn_act(x, w_oihw, scale, bias, stride, padding, relu, skip=None):
    w_hwio = jnp.transpose(w_oihw, (2, 3, 1, 0)).astype(jnp.bfloat16)
    y = lax.conv_general_dilated(
        x.astype(jnp.bfloat16), w_hwio, window_strides=(stride, stride),
        padding=((padding, padding), (padding, padding)),
        dimension_numbers=("NHWC", "HWIO", "NHWC"),
        preferred_element_type=jnp.float32)
    y = y * scale.reshape(1, 1, 1, -1) + bias.reshape(1, 1, 1, -1)
    if skip is not None:
        y = y + skip
    return jnp.maximum(y, 0.0) if relu else y


def reference_forward(params, x_nchw):
    x = jnp.transpose(x_nchw, (0, 2, 3, 1)).astype(jnp.float32)   # NCHW -> NHWC
    s, b = _bn_fold(params["stem_bn"])
    h = _ref_conv_bn_act(x, params["stem_w"], s, b, 1, 1, True)

    s1, b1 = _bn_fold(params["b1_bn1"]); s2, b2 = _bn_fold(params["b1_bn2"])
    o = _ref_conv_bn_act(h, params["b1_w1"], s1, b1, 1, 1, True)
    h = _ref_conv_bn_act(o, params["b1_w2"], s2, b2, 1, 1, True, skip=h)

    s1, b1 = _bn_fold(params["b2_bn1"]); s2, b2 = _bn_fold(params["b2_bn2"])
    ss, bs = _bn_fold(params["b2_bns"])
    sc = _ref_conv_bn_act(h, params["b2_ws"], ss, bs, 2, 0, False)
    o = _ref_conv_bn_act(h, params["b2_w1"], s1, b1, 2, 1, True)
    h = _ref_conv_bn_act(o, params["b2_w2"], s2, b2, 1, 1, True, skip=sc)

    feat = jnp.mean(h, axis=(1, 2))
    z = jnp.dot(feat.astype(jnp.bfloat16), params["fc1_w"].T.astype(jnp.bfloat16),
                preferred_element_type=jnp.float32) + params["fc1_b"]
    z = jnp.maximum(z, 0.0)
    return jnp.dot(z.astype(jnp.bfloat16), params["fc2_w"].T.astype(jnp.bfloat16),
                   preferred_element_type=jnp.float32) + params["fc2_b"]


if __name__ == "__main__":
    root = jax.random.PRNGKey(0)
    k_params, k_x = jax.random.split(root)
    params = init_params(k_params)
    x = jax.random.normal(k_x, (2, 3, 16, 16), dtype=jnp.float32)   # NCHW, like PyTorch

    fwd = jax.jit(custom_resnet_forward)
    out = jax.block_until_ready(fwd(params, x))

    ref = jax.block_until_ready(jax.jit(reference_forward)(params, x))
    assert out.shape == (2, 10), out.shape
    np.testing.assert_allclose(np.asarray(out), np.asarray(ref), rtol=5e-3, atol=5e-3)

    print("KERNEL_OK")
</pallas_src>

<mosaic_0001>
module attributes {stable_mosaic.version = 11 : i64} {
  func.func @_conv_mm_kernel(%arg0: i32, %arg1: memref<16x72xbf16, #tpu.memory_space<vmem>>, %arg2: memref<72x256xbf16, #tpu.memory_space<vmem>>, %arg3: memref<16x1xf32, #tpu.memory_space<vmem>>, %arg4: memref<16x1xf32, #tpu.memory_space<vmem>>, %arg5: memref<16x256xf32, #tpu.memory_space<vmem>>) attributes {dimension_semantics = [#tpu.dimension_semantics<parallel>], iteration_bounds = array<i64: 2>, scalar_prefetch = 0 : i64, scratch_operands = 0 : i64, tpu.core_type = #tpu.core_type<tc>, window_params = [{pipeline_mode = #tpu.pipeline_mode<synchronous>, transform_indices = @transform_0, window_bounds = array<i64: 16, 72>}, {transform_indices = @transform_1, window_bounds = array<i64: 72, 256>}, {pipeline_mode = #tpu.pipeline_mode<synchronous>, transform_indices = @transform_2, window_bounds = array<i64: 16, 1>}, {pipeline_mode = #tpu.pipeline_mode<synchronous>, transform_indices = @transform_3, window_bounds = array<i64: 16, 1>}, {transform_indices = @transform_4, window_bounds = array<i64: 16, 256>}]} {
    %c0 = arith.constant 0 : index
    %c0_0 = arith.constant 0 : index
    %0 = vector.load %arg1[%c0, %c0_0] : memref<16x72xbf16, #tpu.memory_space<vmem>>, vector<16x72xbf16>
    %c0_1 = arith.constant 0 : index
    %c0_2 = arith.constant 0 : index
    %1 = vector.load %arg2[%c0_1, %c0_2] : memref<72x256xbf16, #tpu.memory_space<vmem>>, vector<72x256xbf16>
    %cst = arith.constant dense<0.000000e+00> : vector<16x256xf32>
    %2 = tpu.matmul %0, %1, %cst {dimension_numbers = #tpu.dot_dimension_numbers<[1], [0], [0], [1], [0, 0, 1, 1], [], []>} : vector<16x72xbf16>, vector<72x256xbf16>, vector<16x256xf32> -> vector<16x256xf32>
    %c0_3 = arith.constant 0 : index
    %c0_4 = arith.constant 0 : index
    %3 = vector.load %arg3[%c0_3, %c0_4] : memref<16x1xf32, #tpu.memory_space<vmem>>, vector<16x1xf32>
    %4 = vector.broadcast %3 : vector<16x1xf32> to vector<16x256xf32>
    %5 = arith.mulf %2, %4 : vector<16x256xf32>
    %c0_5 = arith.constant 0 : index
    %c0_6 = arith.constant 0 : index
    %6 = vector.load %arg4[%c0_5, %c0_6] : memref<16x1xf32, #tpu.memory_space<vmem>>, vector<16x1xf32>
    %7 = vector.broadcast %6 : vector<16x1xf32> to vector<16x256xf32>
    %8 = arith.addf %5, %7 : vector<16x256xf32>
    %cst_7 = arith.constant 0.000000e+00 : f32
    %9 = vector.broadcast %cst_7 : f32 to vector<16x256xf32>
    %10 = arith.maximumf %8, %9 : vector<16x256xf32>
    %c0_8 = arith.constant 0 : index
    %c0_9 = arith.constant 0 : index
    %11 = vector.load %arg5[%c0_8, %c0_9] : memref<16x256xf32, #tpu.memory_space<vmem>>, vector<16x256xf32>
    tpu.vector_store %arg5[%c0_8, %c0_9], %10 {strides = array<i32>} : memref<16x256xf32, #tpu.memory_space<vmem>>, vector<16x256xf32>,
    return
  }
  func.func @transform_0(%arg0: i32) -> (i32, i32) {
    %c0_i32 = arith.constant 0 : i32
    %c0_i32_0 = arith.constant 0 : i32
    %c0_i32_1 = arith.constant 0 : i32
    return %c0_i32, %c0_i32_0 : i32, i32
  }
  func.func @transform_1(%arg0: i32) -> (i32, i32) {
    %c0_i32 = arith.constant 0 : i32
    %c0_i32_0 = arith.constant 0 : i32
    return %c0_i32, %arg0 : i32, i32
  }
  func.func @transform_2(%arg0: i32) -> (i32, i32) {
    %c0_i32 = arith.constant 0 : i32
    %c0_i32_0 = arith.constant 0 : i32
    %c0_i32_1 = arith.constant 0 : i32
    return %c0_i32, %c0_i32_0 : i32, i32
  }
  func.func @transform_3(%arg0: i32) -> (i32, i32) {
    %c0_i32 = arith.constant 0 : i32
    %c0_i32_0 = arith.constant 0 : i32
    %c0_i32_1 = arith.constant 0 : i32
    return %c0_i32, %c0_i32_0 : i32, i32
  }
  func.func @transform_4(%arg0: i32) -> (i32, i32) {
    %c0_i32 = arith.constant 0 : i32
    %c0_i32_0 = arith.constant 0 : i32
    return %c0_i32, %arg0 : i32, i32
  }
}

module attributes {stable_mosaic.version = 11 : i64} {
  func.func @_conv_mm_kernel(%arg0: i32, %arg1: memref<16x144xbf16, #tpu.memory_space<vmem>>, %arg2: memref<144x256xbf16, #tpu.memory_space<vmem>>, %arg3: memref<16x1xf32, #tpu.memory_space<vmem>>, %arg4: memref<16x1xf32, #tpu.memory_space<vmem>>, %arg5: memref<16x256xf32, #tpu.memory_space<vmem>>) attributes {dimension_semantics = [#tpu.dimension_semantics<parallel>], iteration_bounds = array<i64: 2>, scalar_prefetch = 0 : i64, scratch_operands = 0 : i64, tpu.core_type = #tpu.core_type<tc>, window_params = [{pipeline_mode = #tpu.pipeline_mode<synchronous>, transform_indices = @transform_0, window_bounds = array<i64: 16, 144>}, {transform_indices = @transform_1, window_bounds = array<i64: 144, 256>}, {pipeline_mode = #tpu.pipeline_mode<synchronous>, transform_indices = @transform_2, window_bounds = array<i64: 16, 1>}, {pipeline_mode = #tpu.pipeline_mode<synchronous>, transform_indices = @transform_3, window_bounds = array<i64: 16, 1>}, {transform_indices = @transform_4, window_bounds = array<i64: 16, 256>}]} {
    %c0 = arith.constant 0 : index
    %c0_0 = arith.constant 0 : index
    %0 = vector.load %arg1[%c0, %c0_0] : memref<16x144xbf16, #tpu.memory_space<vmem>>, vector<16x144xbf16>
    %c0_1 = arith.constant 0 : index
    %c0_2 = arith.constant 0 : index
    %1 = vector.load %arg2[%c0_1, %c0_2] : memref<144x256xbf16, #tpu.memory_space<vmem>>, vector<144x256xbf16>
    %cst = arith.constant dense<0.000000e+00> : vector<16x256xf32>
    %2 = tpu.matmul %0, %1, %cst {dimension_numbers = #tpu.dot_dimension_numbers<[1], [0], [0], [1], [0, 0, 1, 1], [], []>} : vector<16x144xbf16>, vector<144x256xbf16>, vector<16x256xf32> -> vector<16x256xf32>
    %c0_3 = arith.constant 0 : index
    %c0_4 = arith.constant 0 : index
    %3 = vector.load %arg3[%c0_3, %c0_4] : memref<16x1xf32, #tpu.memory_space<vmem>>, vector<16x1xf32>
    %4 = vector.broadcast %3 : vector<16x1xf32> to vector<16x256xf32>
    %5 = arith.mulf %2, %4 : vector<16x256xf32>
    %c0_5 = arith.constant 0 : index
    %c0_6 = arith.constant 0 : index
    %6 = vector.load %arg4[%c0_5, %c0_6] : memref<16x1xf32, #tpu.memory_space<vmem>>, vector<16x1xf32>
    %7 = vector.broadcast %6 : vector<16x1xf32> to vector<16x256xf32>
    %8 = arith.addf %5, %7 : vector<16x256xf32>
    %cst_7 = arith.constant 0.000000e+00 : f32
    %9 = vector.broadcast %cst_7 : f32 to vector<16x256xf32>
    %10 = arith.maximumf %8, %9 : vector<16x256xf32>
    %c0_8 = arith.constant 0 : index
    %c0_9 = arith.constant 0 : index
    %11 = vector.load %arg5[%c0_8, %c0_9] : memref<16x256xf32, #tpu.memory_space<vmem>>, vector<16x256xf32>
    tpu.vector_store %arg5[%c0_8, %c0_9], %10 {strides = array<i32>} : memref<16x256xf32, #tpu.memory_space<vmem>>, vector<16x256xf32>,
    return
  }
  func.func @transform_0(%arg0: i32) -> (i32, i32) {
    %c0_i32 = arith.constant 0 : i32
    %c0_i32_0 = arith.constant 0 : i32
    %c0_i32_1 = arith.constant 0 : i32
    return %c0_i32, %c0_i32_0 : i32, i32
  }
  func.func @transform_1(%arg0: i32) -> (i32, i32) {
    %c0_i32 = arith.constant 0 : i32
    %c0_i32_0 = arith.constant 0 : i32
    return %c0_i32, %arg0 : i32, i32
  }
  func.func @transform_2(%arg0: i32) -> (i32, i32) {
    %c0_i32 = arith.constant 0 : i32
    %c0_i32_0 = arith.constant 0 : i32
    %c0_i32_1 = arith.constant 0 : i32
    return %c0_i32, %c0_i32_0 : i32, i32
  }
  func.func @transform_3(%arg0: i32) -> (i32, i32) {
    %c0_i32 = arith.constant 0 : i32
    %c0_i32_0 = arith.constant 0 : i32
    %c0_i32_1 = arith.constant 0 : i32
    return %c0_i32, %c0_i32_0 : i32, i32
  }
  func.func @transform_4(%arg0: i32) -> (i32, i32) {
    %c0_i32 = arith.constant 0 : i32
    %c0_i32_0 = arith.constant 0 : i32
    return %c0_i32, %arg0 : i32, i32
  }
}

module attributes {stable_mosaic.version = 11 : i64} {
  func.func @_conv_mm_kernel(%arg0: i32, %arg1: memref<16x144xbf16, #tpu.memory_space<vmem>>, %arg2: memref<144x256xbf16, #tpu.memory_space<vmem>>, %arg3: memref<16x1xf32, #tpu.memory_space<vmem>>, %arg4: memref<16x1xf32, #tpu.memory_space<vmem>>, %arg5: memref<16x256xf32, #tpu.memory_space<vmem>>, %arg6: memref<16x256xf32, #tpu.memory_space<vmem>>) attributes {dimension_semantics = [#tpu.dimension_semantics<parallel>], iteration_bounds = array<i64: 2>, scalar_prefetch = 0 : i64, scratch_operands = 0 : i64, tpu.core_type = #tpu.core_type<tc>, window_params = [{pipeline_mode = #tpu.pipeline_mode<synchronous>, transform_indices = @transform_0, window_bounds = array<i64: 16, 144>}, {transform_indices = @transform_1, window_bounds = array<i64: 144, 256>}, {pipeline_mode = #tpu.pipeline_mode<synchronous>, transform_indices = @transform_2, window_bounds = array<i64: 16, 1>}, {pipeline_mode = #tpu.pipeline_mode<synchronous>, transform_indices = @transform_3, window_bounds = array<i64: 16, 1>}, {transform_indices = @transform_4, window_bounds = array<i64: 16, 256>}, {transform_indices = @transform_5, window_bounds = array<i64: 16, 256>}]} {
    %c0 = arith.constant 0 : index
    %c0_0 = arith.constant 0 : index
    %0 = vector.load %arg1[%c0, %c0_0] : memref<16x144xbf16, #tpu.memory_space<vmem>>, vector<16x144xbf16>
    %c0_1 = arith.constant 0 : index
    %c0_2 = arith.constant 0 : index
    %1 = vector.load %arg2[%c0_1, %c0_2] : memref<144x256xbf16, #tpu.memory_space<vmem>>, vector<144x256xbf16>
    %cst = arith.constant dense<0.000000e+00> : vector<16x256xf32>
    %2 = tpu.matmul %0, %1, %cst {dimension_numbers = #tpu.dot_dimension_numbers<[1], [0], [0], [1], [0, 0, 1, 1], [], []>} : vector<16x144xbf16>, vector<144x256xbf16>, vector<16x256xf32> -> vector<16x256xf32>
    %c0_3 = arith.constant 0 : index
    %c0_4 = arith.constant 0 : index
    %3 = vector.load %arg3[%c0_3, %c0_4] : memref<16x1xf32, #tpu.memory_space<vmem>>, vector<16x1xf32>
    %4 = vector.broadcast %3 : vector<16x1xf32> to vector<16x256xf32>
    %5 = arith.mulf %2, %4 : vector<16x256xf32>
    %c0_5 = arith.constant 0 : index
    %c0_6 = arith.constant 0 : index
    %6 = vector.load %arg4[%c0_5, %c0_6] : memref<16x1xf32, #tpu.memory_space<vmem>>, vector<16x1xf32>
    %7 = vector.broadcast %6 : vector<16x1xf32> to vector<16x256xf32>
    %8 = arith.addf %5, %7 : vector<16x256xf32>
    %c0_7 = arith.constant 0 : index
    %c0_8 = arith.constant 0 : index
    %9 = vector.load %arg5[%c0_7, %c0_8] : memref<16x256xf32, #tpu.memory_space<vmem>>, vector<16x256xf32>
    %10 = arith.addf %8, %9 : vector<16x256xf32>
    %cst_9 = arith.constant 0.000000e+00 : f32
    %11 = vector.broadcast %cst_9 : f32 to vector<16x256xf32>
    %12 = arith.maximumf %10, %11 : vector<16x256xf32>
    %c0_10 = arith.constant 0 : index
    %c0_11 = arith.constant 0 : index
    %13 = vector.load %arg6[%c0_10, %c0_11] : memref<16x256xf32, #tpu.memory_space<vmem>>, vector<16x256xf32>
    tpu.vector_store %arg6[%c0_10, %c0_11], %12 {strides = array<i32>} : memref<16x256xf32, #tpu.memory_space<vmem>>, vector<16x256xf32>,
    return
  }
  func.func @transform_0(%arg0: i32) -> (i32, i32) {
    %c0_i32 = arith.constant 0 : i32
    %c0_i32_0 = arith.constant 0 : i32
    %c0_i32_1 = arith.constant 0 : i32
    return %c0_i32, %c0_i32_0 : i32, i32
  }
  func.func @transform_1(%arg0: i32) -> (i32, i32) {
    %c0_i32 = arith.constant 0 : i32
    %c0_i32_0 = arith.constant 0 : i32
    return %c0_i32, %arg0 : i32, i32
  }
  func.func @transform_2(%arg0: i32) -> (i32, i32) {
    %c0_i32 = arith.constant 0 : i32
    %c0_i32_0 = arith.constant 0 : i32
    %c0_i32_1 = arith.constant 0 : i32
    return %c0_i32, %c0_i32_0 : i32, i32
  }
  func.func @transform_3(%arg0: i32) -> (i32, i32) {
    %c0_i32 = arith.constant 0 : i32
    %c0_i32_0 = arith.constant 0 : i32
    %c0_i32_1 = arith.constant 0 : i32
    return %c0_i32, %c0_i32_0 : i32, i32
  }
  func.func @transform_4(%arg0: i32) -> (i32, i32) {
    %c0_i32 = arith.constant 0 : i32
    %c0_i32_0 = arith.constant 0 : i32
    return %c0_i32, %arg0 : i32, i32
  }
  func.func @transform_5(%arg0: i32) -> (i32, i32) {
    %c0_i32 = arith.constant 0 : i32
    %c0_i32_0 = arith.constant 0 : i32
    return %c0_i32, %arg0 : i32, i32
  }
}

module attributes {stable_mosaic.version = 11 : i64} {
  func.func @_conv_mm_kernel(%arg0: i32, %arg1: memref<32x144xbf16, #tpu.memory_space<vmem>>, %arg2: memref<144x128xbf16, #tpu.memory_space<vmem>>, %arg3: memref<32x1xf32, #tpu.memory_space<vmem>>, %arg4: memref<32x1xf32, #tpu.memory_space<vmem>>, %arg5: memref<32x128xf32, #tpu.memory_space<vmem>>) attributes {dimension_semantics = [#tpu.dimension_semantics<parallel>], iteration_bounds = array<i64: 1>, scalar_prefetch = 0 : i64, scratch_operands = 0 : i64, tpu.core_type = #tpu.core_type<tc>, window_params = [{pipeline_mode = #tpu.pipeline_mode<synchronous>, transform_indices = @transform_0, window_bounds = array<i64: 32, 144>}, {transform_indices = @transform_1, window_bounds = array<i64: 144, 128>}, {pipeline_mode = #tpu.pipeline_mode<synchronous>, transform_indices = @transform_2, window_bounds = array<i64: 32, 1>}, {pipeline_mode = #tpu.pipeline_mode<synchronous>, transform_indices = @transform_3, window_bounds = array<i64: 32, 1>}, {transform_indices = @transform_4, window_bounds = array<i64: 32, 128>}]} {
    %c0 = arith.constant 0 : index
    %c0_0 = arith.constant 0 : index
    %0 = vector.load %arg1[%c0, %c0_0] : memref<32x144xbf16, #tpu.memory_space<vmem>>, vector<32x144xbf16>
    %c0_1 = arith.constant 0 : index
    %c0_2 = arith.constant 0 : index
    %1 = vector.load %arg2[%c0_1, %c0_2] : memref<144x128xbf16, #tpu.memory_space<vmem>>, vector<144x128xbf16>
    %cst = arith.constant dense<0.000000e+00> : vector<32x128xf32>
    %2 = tpu.matmul %0, %1, %cst {dimension_numbers = #tpu.dot_dimension_numbers<[1], [0], [0], [1], [0, 0, 1, 1], [], []>} : vector<32x144xbf16>, vector<144x128xbf16>, vector<32x128xf32> -> vector<32x128xf32>
    %c0_3 = arith.constant 0 : index
    %c0_4 = arith.constant 0 : index
    %3 = vector.load %arg3[%c0_3, %c0_4] : memref<32x1xf32, #tpu.memory_space<vmem>>, vector<32x1xf32>
    %4 = vector.broadcast %3 : vector<32x1xf32> to vector<32x128xf32>
    %5 = arith.mulf %2, %4 : vector<32x128xf32>
    %c0_5 = arith.constant 0 : index
    %c0_6 = arith.constant 0 : index
    %6 = vector.load %arg4[%c0_5, %c0_6] : memref<32x1xf32, #tpu.memory_space<vmem>>, vector<32x1xf32>
    %7 = vector.broadcast %6 : vector<32x1xf32> to vector<32x128xf32>
    %8 = arith.addf %5, %7 : vector<32x128xf32>
    %cst_7 = arith.constant 0.000000e+00 : f32
    %9 = vector.broadcast %cst_7 : f32 to vector<32x128xf32>
    %10 = arith.maximumf %8, %9 : vector<32x128xf32>
    %c0_8 = arith.constant 0 : index
    %c0_9 = arith.constant 0 : index
    %11 = vector.load %arg5[%c0_8, %c0_9] : memref<32x128xf32, #tpu.memory_space<vmem>>, vector<32x128xf32>
    tpu.vector_store %arg5[%c0_8, %c0_9], %10 {strides = array<i32>} : memref<32x128xf32, #tpu.memory_space<vmem>>, vector<32x128xf32>,
    return
  }
  func.func @transform_0(%arg0: i32) -> (i32, i32) {
    %c0_i32 = arith.constant 0 : i32
    %c0_i32_0 = arith.constant 0 : i32
    %c0_i32_1 = arith.constant 0 : i32
    return %c0_i32, %c0_i32_0 : i32, i32
  }
  func.func @transform_1(%arg0: i32) -> (i32, i32) {
    %c0_i32 = arith.constant 0 : i32
    %c0_i32_0 = arith.constant 0 : i32
    return %c0_i32, %arg0 : i32, i32
  }
  func.func @transform_2(%arg0: i32) -> (i32, i32) {
    %c0_i32 = arith.constant 0 : i32
    %c0_i32_0 = arith.constant 0 : i32
    %c0_i32_1 = arith.constant 0 : i32
    return %c0_i32, %c0_i32_0 : i32, i32
  }
  func.func @transform_3(%arg0: i32) -> (i32, i32) {
    %c0_i32 = arith.constant 0 : i32
    %c0_i32_0 = arith.constant 0 : i32
    %c0_i32_1 = arith.constant 0 : i32
    return %c0_i32, %c0_i32_0 : i32, i32
  }
  func.func @transform_4(%arg0: i32) -> (i32, i32) {
    %c0_i32 = arith.constant 0 : i32
    %c0_i32_0 = arith.constant 0 : i32
    return %c0_i32, %arg0 : i32, i32
  }
}

module attributes {stable_mosaic.version = 11 : i64} {
  func.func @_conv_mm_kernel(%arg0: i32, %arg1: memref<32x16xbf16, #tpu.memory_space<vmem>>, %arg2: memref<16x128xbf16, #tpu.memory_space<vmem>>, %arg3: memref<32x1xf32, #tpu.memory_space<vmem>>, %arg4: memref<32x1xf32, #tpu.memory_space<vmem>>, %arg5: memref<32x128xf32, #tpu.memory_space<vmem>>) attributes {dimension_semantics = [#tpu.dimension_semantics<parallel>], iteration_bounds = array<i64: 1>, scalar_prefetch = 0 : i64, scratch_operands = 0 : i64, tpu.core_type = #tpu.core_type<tc>, window_params = [{pipeline_mode = #tpu.pipeline_mode<synchronous>, transform_indices = @transform_0, window_bounds = array<i64: 32, 16>}, {transform_indices = @transform_1, window_bounds = array<i64: 16, 128>}, {pipeline_mode = #tpu.pipeline_mode<synchronous>, transform_indices = @transform_2, window_bounds = array<i64: 32, 1>}, {pipeline_mode = #tpu.pipeline_mode<synchronous>, transform_indices = @transform_3, window_bounds = array<i64: 32, 1>}, {transform_indices = @transform_4, window_bounds = array<i64: 32, 128>}]} {
    %c0 = arith.constant 0 : index
    %c0_0 = arith.constant 0 : index
    %0 = vector.load %arg1[%c0, %c0_0] : memref<32x16xbf16, #tpu.memory_space<vmem>>, vector<32x16xbf16>
    %c0_1 = arith.constant 0 : index
    %c0_2 = arith.constant 0 : index
    %1 = vector.load %arg2[%c0_1, %c0_2] : memref<16x128xbf16, #tpu.memory_space<vmem>>, vector<16x128xbf16>
    %cst = arith.constant dense<0.000000e+00> : vector<32x128xf32>
    %2 = tpu.matmul %0, %1, %cst {dimension_numbers = #tpu.dot_dimension_numbers<[1], [0], [0], [1], [0, 0, 1, 1], [], []>} : vector<32x16xbf16>, vector<16x128xbf16>, vector<32x128xf32> -> vector<32x128xf32>
    %c0_3 = arith.constant 0 : index
    %c0_4 = arith.constant 0 : index
    %3 = vector.load %arg3[%c0_3, %c0_4] : memref<32x1xf32, #tpu.memory_space<vmem>>, vector<32x1xf32>
    %4 = vector.broadcast %3 : vector<32x1xf32> to vector<32x128xf32>
    %5 = arith.mulf %2, %4 : vector<32x128xf32>
    %c0_5 = arith.constant 0 : index
    %c0_6 = arith.constant 0 : index
    %6 = vector.load %arg4[%c0_5, %c0_6] : memref<32x1xf32, #tpu.memory_space<vmem>>, vector<32x1xf32>
    %7 = vector.broadcast %6 : vector<32x1xf32> to vector<32x128xf32>
    %8 = arith.addf %5, %7 : vector<32x128xf32>
    %c0_7 = arith.constant 0 : index
    %c0_8 = arith.constant 0 : index
    %9 = vector.load %arg5[%c0_7, %c0_8] : memref<32x128xf32, #tpu.memory_space<vmem>>, vector<32x128xf32>
    tpu.vector_store %arg5[%c0_7, %c0_8], %8 {strides = array<i32>} : memref<32x128xf32, #tpu.memory_space<vmem>>, vector<32x128xf32>,
    return
  }
  func.func @transform_0(%arg0: i32) -> (i32, i32) {
    %c0_i32 = arith.constant 0 : i32
    %c0_i32_0 = arith.constant 0 : i32
    %c0_i32_1 = arith.constant 0 : i32
    return %c0_i32, %c0_i32_0 : i32, i32
  }
  func.func @transform_1(%arg0: i32) -> (i32, i32) {
    %c0_i32 = arith.constant 0 : i32
    %c0_i32_0 = arith.constant 0 : i32
    return %c0_i32, %arg0 : i32, i32
  }
  func.func @transform_2(%arg0: i32) -> (i32, i32) {
    %c0_i32 = arith.constant 0 : i32
    %c0_i32_0 = arith.constant 0 : i32
    %c0_i32_1 = arith.constant 0 : i32
    return %c0_i32, %c0_i32_0 : i32, i32
  }
  func.func @transform_3(%arg0: i32) -> (i32, i32) {
    %c0_i32 = arith.constant 0 : i32
    %c0_i32_0 = arith.constant 0 : i32
    %c0_i32_1 = arith.constant 0 : i32
    return %c0_i32, %c0_i32_0 : i32, i32
  }
  func.func @transform_4(%arg0: i32) -> (i32, i32) {
    %c0_i32 = arith.constant 0 : i32
    %c0_i32_0 = arith.constant 0 : i32
    return %c0_i32, %arg0 : i32, i32
  }
}

module attributes {stable_mosaic.version = 11 : i64} {
  func.func @_conv_mm_kernel(%arg0: i32, %arg1: memref<32x288xbf16, #tpu.memory_space<vmem>>, %arg2: memref<288x128xbf16, #tpu.memory_space<vmem>>, %arg3: memref<32x1xf32, #tpu.memory_space<vmem>>, %arg4: memref<32x1xf32, #tpu.memory_space<vmem>>, %arg5: memref<32x128xf32, #tpu.memory_space<vmem>>, %arg6: memref<32x128xf32, #tpu.memory_space<vmem>>) attributes {dimension_semantics = [#tpu.dimension_semantics<parallel>], iteration_bounds = array<i64: 1>, scalar_prefetch = 0 : i64, scratch_operands = 0 : i64, tpu.core_type = #tpu.core_type<tc>, window_params = [{pipeline_mode = #tpu.pipeline_mode<synchronous>, transform_indices = @transform_0, window_bounds = array<i64: 32, 288>}, {transform_indices = @transform_1, window_bounds = array<i64: 288, 128>}, {pipeline_mode = #tpu.pipeline_mode<synchronous>, transform_indices = @transform_2, window_bounds = array<i64: 32, 1>}, {pipeline_mode = #tpu.pipeline_mode<synchronous>, transform_indices = @transform_3, window_bounds = array<i64: 32, 1>}, {transform_indices = @transform_4, window_bounds = array<i64: 32, 128>}, {transform_indices = @transform_5, window_bounds = array<i64: 32, 128>}]} {
    %c0 = arith.constant 0 : index
    %c0_0 = arith.constant 0 : index
    %0 = vector.load %arg1[%c0, %c0_0] : memref<32x288xbf16, #tpu.memory_space<vmem>>, vector<32x288xbf16>
    %c0_1 = arith.constant 0 : index
    %c0_2 = arith.constant 0 : index
    %1 = vector.load %arg2[%c0_1, %c0_2] : memref<288x128xbf16, #tpu.memory_space<vmem>>, vector<288x128xbf16>
    %cst = arith.constant dense<0.000000e+00> : vector<32x128xf32>
    %2 = tpu.matmul %0, %1, %cst {dimension_numbers = #tpu.dot_dimension_numbers<[1], [0], [0], [1], [0, 0, 1, 1], [], []>} : vector<32x288xbf16>, vector<288x128xbf16>, vector<32x128xf32> -> vector<32x128xf32>
    %c0_3 = arith.constant 0 : index
    %c0_4 = arith.constant 0 : index
    %3 = vector.load %arg3[%c0_3, %c0_4] : memref<32x1xf32, #tpu.memory_space<vmem>>, vector<32x1xf32>
    %4 = vector.broadcast %3 : vector<32x1xf32> to vector<32x128xf32>
    %5 = arith.mulf %2, %4 : vector<32x128xf32>
    %c0_5 = arith.constant 0 : index
    %c0_6 = arith.constant 0 : index
    %6 = vector.load %arg4[%c0_5, %c0_6] : memref<32x1xf32, #tpu.memory_space<vmem>>, vector<32x1xf32>
    %7 = vector.broadcast %6 : vector<32x1xf32> to vector<32x128xf32>
    %8 = arith.addf %5, %7 : vector<32x128xf32>
    %c0_7 = arith.constant 0 : index
    %c0_8 = arith.constant 0 : index
    %9 = vector.load %arg5[%c0_7, %c0_8] : memref<32x128xf32, #tpu.memory_space<vmem>>, vector<32x128xf32>
    %10 = arith.addf %8, %9 : vector<32x128xf32>
    %cst_9 = arith.constant 0.000000e+00 : f32
    %11 = vector.broadcast %cst_9 : f32 to vector<32x128xf32>
    %12 = arith.maximumf %10, %11 : vector<32x128xf32>
    %c0_10 = arith.constant 0 : index
    %c0_11 = arith.constant 0 : index
    %13 = vector.load %arg6[%c0_10, %c0_11] : memref<32x128xf32, #tpu.memory_space<vmem>>, vector<32x128xf32>
    tpu.vector_store %arg6[%c0_10, %c0_11], %12 {strides = array<i32>} : memref<32x128xf32, #tpu.memory_space<vmem>>, vector<32x128xf32>,
    return
  }
  func.func @transform_0(%arg0: i32) -> (i32, i32) {
    %c0_i32 = arith.constant 0 : i32
    %c0_i32_0 = arith.constant 0 : i32
    %c0_i32_1 = arith.constant 0 : i32
    return %c0_i32, %c0_i32_0 : i32, i32
  }
  func.func @transform_1(%arg0: i32) -> (i32, i32) {
    %c0_i32 = arith.constant 0 : i32
    %c0_i32_0 = arith.constant 0 : i32
    return %c0_i32, %arg0 : i32, i32
  }
  func.func @transform_2(%arg0: i32) -> (i32, i32) {
    %c0_i32 = arith.constant 0 : i32
    %c0_i32_0 = arith.constant 0 : i32
    %c0_i32_1 = arith.constant 0 : i32
    return %c0_i32, %c0_i32_0 : i32, i32
  }
  func.func @transform_3(%arg0: i32) -> (i32, i32) {
    %c0_i32 = arith.constant 0 : i32
    %c0_i32_0 = arith.constant 0 : i32
    %c0_i32_1 = arith.constant 0 : i32
    return %c0_i32, %c0_i32_0 : i32, i32
  }
  func.func @transform_4(%arg0: i32) -> (i32, i32) {
    %c0_i32 = arith.constant 0 : i32
    %c0_i32_0 = arith.constant 0 : i32
    return %c0_i32, %arg0 : i32, i32
  }
  func.func @transform_5(%arg0: i32) -> (i32, i32) {
    %c0_i32 = arith.constant 0 : i32
    %c0_i32_0 = arith.constant 0 : i32
    return %c0_i32, %arg0 : i32, i32
  }
}

module attributes {stable_mosaic.version = 11 : i64} {
  func.func @_head_kernel(%arg0: memref<32x2x64xf32, #tpu.memory_space<vmem>>, %arg1: memref<64x32xbf16, #tpu.memory_space<vmem>>, %arg2: memref<64x1xf32, #tpu.memory_space<vmem>>, %arg3: memref<10x64xbf16, #tpu.memory_space<vmem>>, %arg4: memref<10x1xf32, #tpu.memory_space<vmem>>, %arg5: memref<10x2xf32, #tpu.memory_space<vmem>>) attributes {dimension_semantics = [], scalar_prefetch = 0 : i64, scratch_operands = 0 : i64, tpu.core_type = #tpu.core_type<tc>} {
    %c0 = arith.constant 0 : index
    %c0_0 = arith.constant 0 : index
    %c0_1 = arith.constant 0 : index
    %0 = vector.load %arg0[%c0, %c0_0, %c0_1] : memref<32x2x64xf32, #tpu.memory_space<vmem>>, vector<32x2x64xf32>
    %cst = arith.constant dense<0.000000e+00> : vector<32x2xf32>
    %1 = vector.multi_reduction <add>, %0, %cst [2] : vector<32x2x64xf32> to vector<32x2xf32>
    %cst_2 = arith.constant 6.400000e+01 : f32
    %2 = vector.broadcast %cst_2 : f32 to vector<32x2xf32>
    %3 = arith.divf %1, %2 : vector<32x2xf32>
    %c0_3 = arith.constant 0 : index
    %c0_4 = arith.constant 0 : index
    %4 = vector.load %arg1[%c0_3, %c0_4] : memref<64x32xbf16, #tpu.memory_space<vmem>>, vector<64x32xbf16>
    %5 = arith.truncf %3 : vector<32x2xf32> to vector<32x2xbf16>
    %cst_5 = arith.constant dense<0.000000e+00> : vector<64x2xf32>
    %6 = tpu.matmul %4, %5, %cst_5 {dimension_numbers = #tpu.dot_dimension_numbers<[1], [0], [0], [1], [0, 0, 1, 1], [], []>} : vector<64x32xbf16>, vector<32x2xbf16>, vector<64x2xf32> -> vector<64x2xf32>
    %c0_6 = arith.constant 0 : index
    %c0_7 = arith.constant 0 : index
    %7 = vector.load %arg2[%c0_6, %c0_7] : memref<64x1xf32, #tpu.memory_space<vmem>>, vector<64x1xf32>
    %8 = vector.broadcast %7 : vector<64x1xf32> to vector<64x2xf32>
    %9 = arith.addf %6, %8 : vector<64x2xf32>
    %cst_8 = arith.constant 0.000000e+00 : f32
    %10 = vector.broadcast %cst_8 : f32 to vector<64x2xf32>
    %11 = arith.maximumf %9, %10 : vector<64x2xf32>
    %c0_9 = arith.constant 0 : index
    %c0_10 = arith.constant 0 : index
    %12 = vector.load %arg3[%c0_9, %c0_10] : memref<10x64xbf16, #tpu.memory_space<vmem>>, vector<10x64xbf16>
    %13 = arith.truncf %11 : vector<64x2xf32> to vector<64x2xbf16>
    %cst_11 = arith.constant dense<0.000000e+00> : vector<10x2xf32>
    %14 = tpu.matmul %12, %13, %cst_11 {dimension_numbers = #tpu.dot_dimension_numbers<[1], [0], [0], [1], [0, 0, 1, 1], [], []>} : vector<10x64xbf16>, vector<64x2xbf16>, vector<10x2xf32> -> vector<10x2xf32>
    %c0_12 = arith.constant 0 : index
    %c0_13 = arith.constant 0 : index
    %15 = vector.load %arg4[%c0_12, %c0_13] : memref<10x1xf32, #tpu.memory_space<vmem>>, vector<10x1xf32>
    %16 = vector.broadcast %15 : vector<10x1xf32> to vector<10x2xf32>
    %17 = arith.addf %14, %16 : vector<10x2xf32>
    %c0_14 = arith.constant 0 : index
    %c0_15 = arith.constant 0 : index
    %18 = vector.load %arg5[%c0_14, %c0_15] : memref<10x2xf32, #tpu.memory_space<vmem>>, vector<10x2xf32>
    tpu.vector_store %arg5[%c0_14, %c0_15], %17 {strides = array<i32>} : memref<10x2xf32, #tpu.memory_space<vmem>>, vector<10x2xf32>,
    return
  }
}

</mosaic_0001>

<bundles_post_ra>
// kernel: custom_resnet_forward.7
= control target key start
LH: loop header
LB: loop body
LE: loop exit
PB: predicated region body
PF: predicated region fallthrough
CT: control target
= control target key end

     0   :  { %s629_s15 = smov 0   ;;  %s631_s16 = smov 0   ;;  %s708_s0 = inlined_call_operand.vmem [shape: bf16[16,72], index: 0, kind: input, shape index: {}]   ;;  %s709_s1 = inlined_call_operand.vmem [shape: bf16[72,512], index: 1, kind: input, shape index: {}]   ;;  %s710_s2 = inlined_call_operand.vmem [shape: f32[16,1], index: 2, kind: input, shape index: {}]   ;;  %s711_s3 = inlined_call_operand.vmem [shape: f32[16,1], index: 3, kind: input, shape index: {}]   ;;  %s712_s4 = inlined_call_operand.vmem [shape: f32[16,512], index: 4, kind: output, shape index: {}]  }
   0x1   :  { %s633_s17 = smov 0  }
   0x2 LB: > { %s507_s18 = sadd.s32 4294967295, %s601_s17   ;;  %s646_s19 = sadd.s32 1, %s601_s17   ;;  %s601_s17 = sphi %s633_s17, %s716_s17   ;;  %s597_s16 = sphi %s631_s16, %s715_s16   ;;  %s593_s15 = sphi %s629_s15, %s714_s15  }
   0x3   : > { %s39_s20 = ssub.s32 %s601_s17, %s646_s19  ;;  %s42_s21 = sadd.s32 1, %s597_s16 }
   0x4   : > { %p40_p0 = scmp.eq.s32.totalorder %s39_s20, 0  ;;  %p49_p1 = scmp.ne.s32.totalorder %s597_s16, %s593_s15 }
   0x5   : > { %p50_p2 = scmp.eq.s32.totalorder %s601_s17, 0  ;;  %p121_p3 = scmp.eq.s32.totalorder %s507_s18, 1 }
   0x6   : > { %s657_s22 = scalar_select %p40_p0, %s597_s16, %s42_s21  }
   0x7   : > { %p51_p4 = por %p50_p2, %p49_p1  ;;  %p659_p5 = por %p121_p3, %p49_p1 }
   0x8   : > { %p510_p6 = scmp.ge.s32.totalorder %s601_s17, 2 }
   0xa   : > { %152 = sbr.rel (%p510_p6) target bundleno = 24 (0x18), region = 28 }
   0xf   : > { %155 = sbr.rel (!%p51_p4) target bundleno = 24 (0x18), region = 32  ;;  %s157_s24 = sand.u32 (%p51_p4), 1, %s597_s16  }
  0x10   : > { %s533_s25 = sshll.u32 (%p51_p4), %s601_s17, 3  ;;  %s535_s26 = smul.u32 (%p51_p4), 72, %s157_s24 }
  0x11   : > { %s162_s29 = scalar_lea.vmem (%p51_p4), %s709_s1, %s533_s25 }
  0x12   : > { %v207_v0 = vld [vmem:[%s162_s29] sm:$0xff] (%p51_p4)  ;;  %v209_v1 = vld [vmem:[%s162_s29 + $0x10] sm:$0xff] (%p51_p4)  ;;  %s159_s30 = scalar_lea.vmem (%p51_p4), [#allocation2], %s535_s26 }
  0x13   : > { %v211_v2 = vld [vmem:[%s162_s29 + $0x20] sm:$0xff] (%p51_p4)  ;;  %v213_v3 = vld [vmem:[%s162_s29 + $0x30] sm:$0xff] (%p51_p4)  ;;  %208 = vst [vmem:[%s159_s30] sm:$0xff] (%p51_p4), %v207_v0  ;;  %210 = vst [vmem:[%s159_s30 + $0x8] sm:$0xff] (%p51_p4), %v209_v1 }
  0x14   : > { %v215_v4 = vld [vmem:[%s162_s29 + $0x40] sm:$0xff]  ;;  %v217_v5 = vld [vmem:[%s162_s29 + $0x50] sm:$0xff]  ;;  %212 = vst [vmem:[%s159_s30 + $0x10] sm:$0xff] %v211_v2  ;;  %214 = vst [vmem:[%s159_s30 + $0x18] sm:$0xff] %v213_v3 }
  0x15   : > { %216 = vst [vmem:[%s159_s30 + $0x20] sm:$0xff] %v215_v4  ;;  %218 = vst [vmem:[%s159_s30 + $0x28] sm:$0xff] %v217_v5  ;;  %v219_v6 = vld [vmem:[%s162_s29 + $0x60] sm:$0xff]  ;;  %v221_v7 = vld [vmem:[%s162_s29 + $0x70] sm:$0xff] }
  0x16   : > { %v223_v8 = vld [vmem:[%s162_s29 + $0x80] sm:$0xff]  ;;  %220 = vst [vmem:[%s159_s30 + $0x30] sm:$0xff] %v219_v6  ;;  %222 = vst [vmem:[%s159_s30 + $0x38] sm:$0xff] %v221_v7 }
  0x17   : > { %224 = vst [vmem:[%s159_s30 + $0x40] sm:$0xff] %v223_v8 }
  0x18 PF: > { %p513_p7 = scmp.ge.s32.totalorder %s601_s17, 1  ;;  %p229_p8 = scmp.lt.s32.totalorder %s601_s17, 3 }
  0x1a   : > { %p230_p9 = pnand %p513_p7, %p229_p8 }
  0x1b   : > { %s236_s5 = sand.u32 (!%p230_p9), 1, %s593_s15  }
  0x1c   : > { %233 = sbr.rel (%p230_p9) target bundleno = 272 (0x110), region = 70  ;;  %s514_s25 = sshll.u32 (!%p230_p9), %s236_s5, 5 }
  0x1d   : > { %s536_s6 = smul.u32 (!%p230_p9), 72, %s236_s5  ;;  %s259_s26 = scalar_lea.vmem (!%p230_p9), [#allocation3], %s514_s25 }
  0x1f   : > { %s238_s20 = scalar_lea.vmem (!%p230_p9), [#allocation2], %s536_s6 }
  0x21   : > { %v603_v9 = vmov 0   ;;  %v378_v10 = vld [vmem:[%s710_s2] sm:$0xff]  ;;  %v379_v12 = vld [vmem:[%s710_s2 + $0x8] sm:$0xff]  ;;  %vm328_vm0 = vcmask 1043456   ;;  %vm324_vm1 = vcmask 588800   ;;  %s534_s15 = sshll.u32 (%p659_p5), %s507_s18, 4 }
  0x22   : > { %367 = vmatprep.mubr.bf16.mxu0 %v603_v9  ;;  %562 = vset.pattern.permute.xlu0 %v603_v9  ;;  %v394_v11 = vld [vmem:[%s711_s3] sm:$0xff]  ;;  %v395_v13 = vld [vmem:[%s711_s3 + $0x8] sm:$0xff]  ;;  %s427_s29 = scalar_lea.vmem (%p659_p5), %s712_s4, %s534_s15 }
  0x23   : > { %382 = vperm.xlu0 %562, %v378_v10   ;;  %563 = vset.pattern.permute.xlu1 %v603_v9  ;;  %v273_v14 = vld [vmem:[%s238_s20 + $0x40] sm:$0xff]  ;;  %v566_v17 = vld [vmem:[%s238_s20 + $0x34] ss:$8 sps:$4 sm:$0xff]   ;;  %v568_v19 = vld [vmem:[%s238_s20 + $0x30] ss:$8 sps:$4 sm:$0xff]  }
  0x24   : > { %398 = vperm.xlu1 %563, %v394_v11   ;;  %v525_v15 = vcombine.high %v273_v14, %v273_v14  ;;  %v524_v16 = vcombine.low %v273_v14, %v273_v14  ;;  %v569_v20 = vld [vmem:[%s238_s20 + $0x24] ss:$8 sps:$4 sm:$0xff]   ;;  %v571_v21 = vld [vmem:[%s238_s20 + $0x20] ss:$8 sps:$4 sm:$0xff]   ;;  %v572_v22 = vld [vmem:[%s238_s20 + $0x14] ss:$8 sps:$4 sm:$0xff]  }
  0x25   : > { %v574_v23 = vld [vmem:[%s238_s20 + $0x10] ss:$8 sps:$4 sm:$0xff]   ;;  %v575_v24 = vld [vmem:[%s238_s20 + $0x4] ss:$8 sps:$4 sm:$0xff]   ;;  %v577_v25 = vld [vmem:[%s238_s20] ss:$8 sps:$4 sm:$0xff]  }
  0x26   : > { %526 = vmatprep.subr.msk.bf16.mxu0 %vm328_vm0, %v525_v15  ;;  %v330_v18 = vsel %vm328_vm0, %v524_v16, 0  ;;  %v578_v26 = vld [vmem:[%s708_s0] sm:$0xff]  }
  0x27   : > { %387 = vperm.xlu0 %562, %v379_v12   ;;  %342 = vmatpush1.bf16.msra.mxu0 %v330_v18 }
  0x28   : > { %403 = vperm.xlu1 %563, %v395_v13   ;;  %343 = vmatprep.subr.bf16.mxu0 %v566_v17 }
  0x2b   : > { %344 = vmatpush1.bf16.msra.mxu0 %v568_v19 }
  0x2c   : > { %345 = vmatprep.subr.bf16.mxu0 %v569_v20 }
  0x2f   : > { %346 = vmatpush1.bf16.msra.mxu0 %v571_v21 }
  0x30   : > { %347 = vmatprep.subr.bf16.mxu0 %v572_v22 }
  0x33   : > { %348 = vmatpush1.bf16.msra.mxu0 %v574_v23 }
  0x34   : > { %349 = vmatprep.subr.bf16.mxu0 %v575_v24 }
  0x37   : > { %350 = vmatpush1.bf16.msra.mxu0 %v577_v25 }
  0x3a   : > { %527 = vmatmul.mubr.msk.bf16.vlgmr.msra.gmra.mxu0 %vm324_vm1, %v578_v26 }
  0x9e   : > { %v383_v27 = vpop.permute.xlu0 %382 }
  0x9f   : > { %v399_v28 = vpop.permute.xlu1 %398 }
  0xa2   : > { %v388_v34 = vpop.permute.xlu0 %387 }
  0xa3   : > { %v404_v39 = vpop.permute.xlu1 %403 }
  0xfa   : > { %v369_v29 = vpop.f32.mrf.mxu0 }
  0xfb   : > { %v390_v30 = vmul.f32 %v383_v27, %v369_v29 }
  0xfc   : > { %v371_v31 = vpop.f32.mrf.mxu0 }
  0xfd   : > { %v406_v32 = vadd.f32 %v399_v28, %v390_v30  ;;  %v391_v33 = vmul.f32 %v383_v27, %v371_v31 }
  0xfe   : > { %v373_v35 = vpop.f32.mrf.mxu0 }
  0xff   : > { %v410_v36 = vmax.f32 %v406_v32, 0.0  ;;  %v407_v37 = vadd.f32 %v399_v28, %v391_v33  ;;  %v392_v38 = vmul.f32 %v388_v34, %v373_v35 }
 0x100   : > { %v375_v40 = vpop.f32.mrf.mxu0 }
 0x101   : > { %414 = vst [vmem:[%s259_s26] sm:$0xff] %v410_v36  ;;  %v411_v41 = vmax.f32 %v407_v37, 0.0  ;;  %v408_v42 = vadd.f32 %v404_v39, %v392_v38  ;;  %v393_v43 = vmul.f32 %v388_v34, %v375_v40 }
 0x103   : > { %415 = vst [vmem:[%s259_s26 + $0x8] sm:$0xff] %v411_v41  ;;  %v412_v44 = vmax.f32 %v408_v42, 0.0  ;;  %v409_v45 = vadd.f32 %v404_v39, %v393_v43  ;;  %424 = sbr.rel (!%p659_p5) target bundleno = 272 (0x110), region = 78 }
 0x105   : > { %416 = vst [vmem:[%s259_s26 + $0x10] sm:$0xff] %v412_v44  ;;  %v413_v46 = vmax.f32 %v409_v45, 0.0 }
 0x107   : > { %417 = vst [vmem:[%s259_s26 + $0x18] sm:$0xff] %v413_v46 }
 0x108   : > { %v440_v47 = vld [vmem:[%s259_s26] sm:$0xff] }
 0x109   : > { %441 = vst [vmem:[%s427_s29] sm:$0xff] %v440_v47 }
 0x10a   : > { %v442_v48 = vld [vmem:[%s259_s26 + $0x8] sm:$0xff] }
 0x10b   : > { %443 = vst [vmem:[%s427_s29 + $0x8] sm:$0xff] %v442_v48 }
 0x10c   : > { %v444_v49 = vld [vmem:[%s259_s26 + $0x10] sm:$0xff] }
 0x10d   : > { %445 = vst [vmem:[%s427_s29 + $0x20] sm:$0xff] %v444_v49 }
 0x10e   : > { %v446_v50 = vld [vmem:[%s259_s26 + $0x18] sm:$0xff] }
 0x10f   : > { %447 = vst [vmem:[%s427_s29 + $0x28] sm:$0xff] %v446_v50 }
 0x110 PF: > { %p11_p10 = scmp.ge.s32.totalorder %s646_s19, 4   ;;  %s714_s15 = smov %s597_s16 }
 0x111   : > { %s715_s16 = smov %s657_s22  ;;  %s716_s17 = smov %s646_s19 }
 0x112   :  { %13 = sbr.rel (!%p11_p10) target bundleno = 2 (0x2), region = 132 }

// kernel: custom_resnet_forward.8
= control target key start
LH: loop header
LB: loop body
LE: loop exit
PB: predicated region body
PF: predicated region fallthrough
CT: control target
= control target key end

     0   :  { %s739_s15 = smov 0   ;;  %s741_s16 = smov 0   ;;  %s861_s0 = inlined_call_operand.vmem [shape: bf16[16,144], index: 0, kind: input, shape index: {}]   ;;  %s862_s1 = inlined_call_operand.vmem [shape: bf16[144,512], index: 1, kind: input, shape index: {}]   ;;  %s863_s2 = inlined_call_operand.vmem [shape: f32[16,1], index: 2, kind: input, shape index: {}]   ;;  %s864_s3 = inlined_call_operand.vmem [shape: f32[16,1], index: 3, kind: input, shape index: {}]   ;;  %s865_s4 = inlined_call_operand.vmem [shape: f32[16,512], index: 4, kind: output, shape index: {}]  }
   0x1   :  { %s743_s17 = smov 0  }
   0x2 LB: > { %s594_s18 = sadd.s32 4294967295, %s711_s17   ;;  %s756_s19 = sadd.s32 1, %s711_s17   ;;  %s711_s17 = sphi %s743_s17, %s869_s17   ;;  %s707_s16 = sphi %s741_s16, %s868_s16   ;;  %s703_s15 = sphi %s739_s15, %s867_s15  }
   0x3   : > { %s39_s20 = ssub.s32 %s711_s17, %s756_s19  ;;  %s42_s21 = sadd.s32 1, %s707_s16 }
   0x4   : > { %p40_p0 = scmp.eq.s32.totalorder %s39_s20, 0  ;;  %p49_p1 = scmp.ne.s32.totalorder %s707_s16, %s703_s15 }
   0x5   : > { %p50_p2 = scmp.eq.s32.totalorder %s711_s17, 0  ;;  %p121_p3 = scmp.eq.s32.totalorder %s594_s18, 1 }
   0x6   : > { %s767_s22 = scalar_select %p40_p0, %s707_s16, %s42_s21  }
   0x7   : > { %p51_p4 = por %p50_p2, %p49_p1  ;;  %p769_p5 = por %p121_p3, %p49_p1 }
   0x8   : > { %p597_p6 = scmp.ge.s32.totalorder %s711_s17, 2 }
   0xa   : > { %152 = sbr.rel (%p597_p6) target bundleno = 28 (0x1c), region = 28 }
   0xf   : > { %155 = sbr.rel (!%p51_p4) target bundleno = 28 (0x1c), region = 32  ;;  %s157_s24 = sand.u32 (%p51_p4), 1, %s707_s16  }
  0x10   : > { %s628_s25 = sshll.u32 (%p51_p4), %s711_s17, 3  ;;  %s630_s26 = smul.u32 (%p51_p4), 144, %s157_s24 }
  0x11   : > { %s779_s29 = scalar_lea.vmem (%p51_p4), %s862_s1, %s628_s25 }
  0x12   : > { %v225_v0 = vld [vmem:[%s779_s29] sm:$0xff] (%p51_p4)  ;;  %v227_v1 = vld [vmem:[%s779_s29 + $0x10] sm:$0xff] (%p51_p4)  ;;  %s159_s30 = scalar_lea.vmem (%p51_p4), [#allocation2], %s630_s26 }
  0x13   : > { %v229_v2 = vld [vmem:[%s779_s29 + $0x20] sm:$0xff] (%p51_p4)  ;;  %v231_v3 = vld [vmem:[%s779_s29 + $0x30] sm:$0xff] (%p51_p4)  ;;  %226 = vst [vmem:[%s159_s30] sm:$0xff] (%p51_p4), %v225_v0  ;;  %228 = vst [vmem:[%s159_s30 + $0x8] sm:$0xff] (%p51_p4), %v227_v1 }
  0x14   : > { %v233_v4 = vld [vmem:[%s779_s29 + $0x40] sm:$0xff]  ;;  %v235_v5 = vld [vmem:[%s779_s29 + $0x50] sm:$0xff]  ;;  %230 = vst [vmem:[%s159_s30 + $0x10] sm:$0xff] %v229_v2  ;;  %232 = vst [vmem:[%s159_s30 + $0x18] sm:$0xff] %v231_v3 }
  0x15   : > { %234 = vst [vmem:[%s159_s30 + $0x20] sm:$0xff] %v233_v4  ;;  %236 = vst [vmem:[%s159_s30 + $0x28] sm:$0xff] %v235_v5  ;;  %v237_v6 = vld [vmem:[%s779_s29 + $0x60] sm:$0xff]  ;;  %v239_v7 = vld [vmem:[%s779_s29 + $0x70] sm:$0xff] }
  0x16   : > { %v241_v8 = vld [vmem:[%s779_s29 + $0x80] sm:$0xff]  ;;  %238 = vst [vmem:[%s159_s30 + $0x30] sm:$0xff] %v237_v6  ;;  %240 = vst [vmem:[%s159_s30 + $0x38] sm:$0xff] %v239_v7  ;;  %v243_v9 = vld [vmem:[%s779_s29 + $0x90] sm:$0xff] }
  0x17   : > { %242 = vst [vmem:[%s159_s30 + $0x40] sm:$0xff] %v241_v8  ;;  %v245_v10 = vld [vmem:[%s779_s29 + $0xa0] sm:$0xff]  ;;  %v247_v11 = vld [vmem:[%s779_s29 + $0xb0] sm:$0xff]  ;;  %244 = vst [vmem:[%s159_s30 + $0x48] sm:$0xff] %v243_v9 }
  0x18   : > { %246 = vst [vmem:[%s159_s30 + $0x50] sm:$0xff] %v245_v10  ;;  %248 = vst [vmem:[%s159_s30 + $0x58] sm:$0xff] %v247_v11  ;;  %v249_v12 = vld [vmem:[%s779_s29 + $0xc0] sm:$0xff]  ;;  %v251_v13 = vld [vmem:[%s779_s29 + $0xd0] sm:$0xff] }
  0x19   : > { %v253_v14 = vld [vmem:[%s779_s29 + $0xe0] sm:$0xff]  ;;  %250 = vst [vmem:[%s159_s30 + $0x60] sm:$0xff] %v249_v12  ;;  %252 = vst [vmem:[%s159_s30 + $0x68] sm:$0xff] %v251_v13  ;;  %v255_v15 = vld [vmem:[%s779_s29 + $0xf0] sm:$0xff] }
  0x1a   : > { %254 = vst [vmem:[%s159_s30 + $0x70] sm:$0xff] %v253_v14  ;;  %v257_v16 = vld [vmem:[%s779_s29 + $0x100] sm:$0xff]  ;;  %v259_v17 = vld [vmem:[%s779_s29 + $0x110] sm:$0xff]  ;;  %256 = vst [vmem:[%s159_s30 + $0x78] sm:$0xff] %v255_v15 }
  0x1b   : > { %258 = vst [vmem:[%s159_s30 + $0x80] sm:$0xff] %v257_v16  ;;  %260 = vst [vmem:[%s159_s30 + $0x88] sm:$0xff] %v259_v17 }
  0x1c PF: > { %p600_p7 = scmp.ge.s32.totalorder %s711_s17, 1  ;;  %p265_p8 = scmp.lt.s32.totalorder %s711_s17, 3 }
  0x1e   : > { %p266_p9 = pnand %p600_p7, %p265_p8 }
  0x1f   : > { %s272_s5 = sand.u32 (!%p266_p9), 1, %s703_s15  }
  0x20   : > { %269 = sbr.rel (%p266_p9) target bundleno = 291 (0x123), region = 70  ;;  %s601_s27 = sshll.u32 (!%p266_p9), %s272_s5, 5 }
  0x21   : > { %s631_s6 = smul.u32 (!%p266_p9), 144, %s272_s5  ;;  %s295_s28 = scalar_lea.vmem (!%p266_p9), [#allocation3], %s601_s27 }
  0x23   : > { %s819_s24 = scalar_lea.vmem (!%p266_p9), [#allocation2], %s631_s6 }
  0x25   : > { %vm418_vm0 = vcmask 130048   ;;  %v688_v18 = vld [vmem:[%s861_s0 + $0x4] ss:$8 sps:$4 sm:$0xff]   ;;  %v713_v21 = vmov 0   ;;  %v661_v25 = vld [vmem:[%s819_s24 + $0x70] ss:$8 sps:$4 sm:$0xff]  }
  0x26   : > { %v465_v19 = vld [vmem:[%s863_s2] sm:$0xff]  ;;  %657 = vset.pattern.permute.xlu0 %v713_v21  ;;  %658 = vset.pattern.permute.xlu1 %v713_v21  ;;  %v466_v22 = vld [vmem:[%s863_s2 + $0x8] sm:$0xff]  ;;  %s629_s15 = sshll.u32 (%p769_p5), %s594_s18, 4 }
  0x27   : > { %v481_v20 = vld [vmem:[%s864_s3] sm:$0xff]  ;;  %622 = vmatprep.mubr.msk.bf16.mxu0 %vm418_vm0, %v688_v18  ;;  %469 = vperm.xlu0 %657, %v465_v19   ;;  %v482_v23 = vld [vmem:[%s864_s3 + $0x8] sm:$0xff]  ;;  %s514_s5 = scalar_lea.vmem (%p769_p5), %s865_s4, %s629_s15 }
  0x28   : > { %v659_v24 = vld [vmem:[%s819_s24 + $0x74] ss:$8 sps:$4 sm:$0xff]   ;;  %485 = vperm.xlu1 %658, %v481_v20   ;;  %v662_v26 = vld [vmem:[%s819_s24 + $0x64] ss:$8 sps:$4 sm:$0xff]   ;;  %v664_v27 = vld [vmem:[%s819_s24 + $0x60] ss:$8 sps:$4 sm:$0xff]  }
  0x29   : > { %422 = vmatprep.subr.bf16.mxu0 %v659_v24  ;;  %v665_v28 = vld [vmem:[%s819_s24 + $0x54] ss:$8 sps:$4 sm:$0xff]   ;;  %v667_v29 = vld [vmem:[%s819_s24 + $0x50] ss:$8 sps:$4 sm:$0xff]   ;;  %v668_v30 = vld [vmem:[%s819_s24 + $0x44] ss:$8 sps:$4 sm:$0xff]  }
  0x2a   : > { %423 = vmatpush1.bf16.msra.mxu0 %v661_v25  ;;  %v670_v31 = vld [vmem:[%s819_s24 + $0x40] ss:$8 sps:$4 sm:$0xff]   ;;  %v671_v32 = vld [vmem:[%s819_s24 + $0x34] ss:$8 sps:$4 sm:$0xff]   ;;  %v673_v33 = vld [vmem:[%s819_s24 + $0x30] ss:$8 sps:$4 sm:$0xff]  }
  0x2b   : > { %474 = vperm.xlu0 %657, %v466_v22   ;;  %424 = vmatprep.subr.bf16.mxu0 %v662_v26  ;;  %v674_v34 = vld [vmem:[%s819_s24 + $0x24] ss:$8 sps:$4 sm:$0xff]   ;;  %v676_v35 = vld [vmem:[%s819_s24 + $0x20] ss:$8 sps:$4 sm:$0xff]   ;;  %v677_v36 = vld [vmem:[%s819_s24 + $0x14] ss:$8 sps:$4 sm:$0xff]  }
  0x2c   : > { %490 = vperm.xlu1 %658, %v482_v23   ;;  %v679_v37 = vld [vmem:[%s819_s24 + $0x10] ss:$8 sps:$4 sm:$0xff]   ;;  %v680_v38 = vld [vmem:[%s819_s24 + $0x4] ss:$8 sps:$4 sm:$0xff]   ;;  %v682_v39 = vld [vmem:[%s819_s24] ss:$8 sps:$4 sm:$0xff]  }
  0x2d   : > { %v683_v40 = vld [vmem:[%s819_s24 + $0x84] ss:$8 sps:$4 sm:$0xff]   ;;  %v685_v41 = vld [vmem:[%s819_s24 + $0x80] ss:$8 sps:$4 sm:$0xff]  }
  0x2e   : > { %425 = vmatpush1.bf16.msra.mxu0 %v664_v27  ;;  %v686_v42 = vld [vmem:[%s861_s0] ss:$8 sps:$4 sm:$0xff]  }
  0x2f   : > { %426 = vmatprep.subr.bf16.mxu0 %v665_v28 }
  0x32   : > { %427 = vmatpush1.bf16.msra.mxu0 %v667_v29 }
  0x33   : > { %428 = vmatprep.subr.bf16.mxu0 %v668_v30 }
  0x36   : > { %429 = vmatpush1.bf16.msra.mxu0 %v670_v31 }
  0x37   : > { %430 = vmatprep.subr.bf16.mxu0 %v671_v32 }
  0x3a   : > { %431 = vmatpush1.bf16.msra.mxu0 %v673_v33 }
  0x3b   : > { %432 = vmatprep.subr.bf16.mxu0 %v674_v34 }
  0x3e   : > { %433 = vmatpush1.bf16.msra.mxu0 %v676_v35 }
  0x3f   : > { %434 = vmatprep.subr.bf16.mxu0 %v677_v36 }
  0x42   : > { %435 = vmatpush1.bf16.msra.mxu0 %v679_v37 }
  0x43   : > { %436 = vmatprep.subr.bf16.mxu0 %v680_v38 }
  0x46   : > { %437 = vmatpush1.bf16.msra.mxu0 %v682_v39 }
  0x47   : > { %452 = vmatprep.subr.bf16.mxu0 %v683_v40 }
  0x4a   : > { %453 = vmatpush2.bf16.msra.mxu0 %v685_v41 }
  0x4d   : > { %455 = vmatmul.mubr.bf16.vlgmr.msra.gmra.mxu0 %v686_v42 }
  0xa2   : > { %v470_v43 = vpop.permute.xlu0 %469 }
  0xa3   : > { %v486_v44 = vpop.permute.xlu1 %485 }
  0xa6   : > { %v475_v50 = vpop.permute.xlu0 %474 }
  0xa7   : > { %v491_v55 = vpop.permute.xlu1 %490 }
 0x10d   : > { %v456_v45 = vpop.f32.mrf.mxu0 }
 0x10e   : > { %v477_v46 = vmul.f32 %v470_v43, %v456_v45 }
 0x10f   : > { %v458_v47 = vpop.f32.mrf.mxu0 }
 0x110   : > { %v493_v48 = vadd.f32 %v486_v44, %v477_v46  ;;  %v478_v49 = vmul.f32 %v470_v43, %v458_v47 }
 0x111   : > { %v460_v51 = vpop.f32.mrf.mxu0 }
 0x112   : > { %v497_v52 = vmax.f32 %v493_v48, 0.0  ;;  %v494_v53 = vadd.f32 %v486_v44, %v478_v49  ;;  %v479_v54 = vmul.f32 %v475_v50, %v460_v51 }
 0x113   : > { %v462_v56 = vpop.f32.mrf.mxu0 }
 0x114   : > { %501 = vst [vmem:[%s295_s28] sm:$0xff] %v497_v52  ;;  %v498_v57 = vmax.f32 %v494_v53, 0.0  ;;  %v495_v58 = vadd.f32 %v491_v55, %v479_v54  ;;  %v480_v59 = vmul.f32 %v475_v50, %v462_v56 }
 0x116   : > { %502 = vst [vmem:[%s295_s28 + $0x8] sm:$0xff] %v498_v57  ;;  %v499_v60 = vmax.f32 %v495_v58, 0.0  ;;  %v496_v61 = vadd.f32 %v491_v55, %v480_v59  ;;  %511 = sbr.rel (!%p769_p5) target bundleno = 291 (0x123), region = 78 }
 0x118   : > { %503 = vst [vmem:[%s295_s28 + $0x10] sm:$0xff] %v499_v60  ;;  %v500_v62 = vmax.f32 %v496_v61, 0.0 }
 0x11a   : > { %504 = vst [vmem:[%s295_s28 + $0x18] sm:$0xff] %v500_v62 }
 0x11b   : > { %v527_v63 = vld [vmem:[%s295_s28] sm:$0xff] }
 0x11c   : > { %528 = vst [vmem:[%s514_s5] sm:$0xff] %v527_v63 }
 0x11d   : > { %v529_v0 = vld [vmem:[%s295_s28 + $0x8] sm:$0xff] }
 0x11e   : > { %530 = vst [vmem:[%s514_s5 + $0x8] sm:$0xff] %v529_v0 }
 0x11f   : > { %v531_v1 = vld [vmem:[%s295_s28 + $0x10] sm:$0xff] }
 0x120   : > { %532 = vst [vmem:[%s514_s5 + $0x20] sm:$0xff] %v531_v1 }
 0x121   : > { %v533_v2 = vld [vmem:[%s295_s28 + $0x18] sm:$0xff] }
 0x122   : > { %534 = vst [vmem:[%s514_s5 + $0x28] sm:$0xff] %v533_v2 }
 0x123 PF: > { %p11_p10 = scmp.ge.s32.totalorder %s756_s19, 4   ;;  %s867_s15 = smov %s707_s16 }
 0x124   : > { %s868_s16 = smov %s767_s22  ;;  %s869_s17 = smov %s756_s19 }
 0x125   :  { %13 = sbr.rel (!%p11_p10) target bundleno = 2 (0x2), region = 132 }

// kernel: custom_resnet_forward.9
= control target key start
LH: loop header
LB: loop body
LE: loop exit
PB: predicated region body
PF: predicated region fallthrough
CT: control target
= control target key end

     0   :  { %s849_s18 = smov 0   ;;  %s851_s19 = smov 0   ;;  %s984_s0 = inlined_call_operand.vmem [shape: bf16[16,144], index: 0, kind: input, shape index: {}]   ;;  %s985_s1 = inlined_call_operand.vmem [shape: bf16[144,512], index: 1, kind: input, shape index: {}]   ;;  %s986_s2 = inlined_call_operand.vmem [shape: f32[16,1], index: 2, kind: input, shape index: {}]   ;;  %s987_s3 = inlined_call_operand.vmem [shape: f32[16,1], index: 3, kind: input, shape index: {}]   ;;  %s988_s4 = inlined_call_operand.vmem [shape: f32[16,512], index: 4, kind: input, shape index: {}]   ;;  %s989_s5 = inlined_call_operand.vmem [shape: f32[16,512], index: 5, kind: output, shape index: {}]  }
   0x1   :  { %s853_s20 = smov 0  }
   0x2 LB: > { %s694_s21 = sadd.s32 4294967295, %s816_s20   ;;  %s866_s22 = sadd.s32 1, %s816_s20   ;;  %s816_s20 = sphi %s853_s20, %s994_s20   ;;  %s812_s19 = sphi %s851_s19, %s993_s19   ;;  %s808_s18 = sphi %s849_s18, %s992_s18  }
   0x3   : > { %s40_s23 = ssub.s32 %s816_s20, %s866_s22  ;;  %s43_s24 = sadd.s32 1, %s812_s19 }
   0x4   : > { %p41_p0 = scmp.eq.s32.totalorder %s40_s23, 0  ;;  %p50_p1 = scmp.ne.s32.totalorder %s812_s19, %s808_s18 }
   0x5   : > { %p51_p2 = scmp.eq.s32.totalorder %s816_s20, 0  ;;  %p148_p3 = scmp.eq.s32.totalorder %s694_s21, 1 }
   0x6   : > { %s877_s25 = scalar_select %p41_p0, %s812_s19, %s43_s24  }
   0x7   : > { %p879_p4 = por %p51_p2, %p50_p1  ;;  %p883_p5 = por %p148_p3, %p50_p1 }
   0x8   : > { %p697_p6 = scmp.ge.s32.totalorder %s816_s20, 2 }
   0xa   : > { %179 = sbr.rel (%p697_p6) target bundleno = 34 (0x22), region = 28 }
   0xf   : > { %182 = sbr.rel (!%p879_p4) target bundleno = 28 (0x1c), region = 32  ;;  %s184_s28 = sand.u32 (%p879_p4), 1, %s812_s19  }
  0x10   : > { %s732_s29 = sshll.u32 (%p879_p4), %s816_s20, 3  ;;  %s735_s30 = smul.u32 (%p879_p4), 144, %s184_s28 }
  0x11   : > { %s895_s8 = scalar_lea.vmem (%p879_p4), %s985_s1, %s732_s29 }
  0x12   : > { %v252_v0 = vld [vmem:[%s895_s8] sm:$0xff] (%p879_p4)  ;;  %v254_v1 = vld [vmem:[%s895_s8 + $0x10] sm:$0xff] (%p879_p4)  ;;  %s186_s9 = scalar_lea.vmem (%p879_p4), [#allocation2], %s735_s30 }
  0x13   : > { %v256_v2 = vld [vmem:[%s895_s8 + $0x20] sm:$0xff] (%p879_p4)  ;;  %v258_v3 = vld [vmem:[%s895_s8 + $0x30] sm:$0xff] (%p879_p4)  ;;  %253 = vst [vmem:[%s186_s9] sm:$0xff] (%p879_p4), %v252_v0  ;;  %255 = vst [vmem:[%s186_s9 + $0x8] sm:$0xff] (%p879_p4), %v254_v1 }
  0x14   : > { %v260_v4 = vld [vmem:[%s895_s8 + $0x40] sm:$0xff]  ;;  %v262_v5 = vld [vmem:[%s895_s8 + $0x50] sm:$0xff]  ;;  %257 = vst [vmem:[%s186_s9 + $0x10] sm:$0xff] %v256_v2  ;;  %259 = vst [vmem:[%s186_s9 + $0x18] sm:$0xff] %v258_v3 }
  0x15   : > { %261 = vst [vmem:[%s186_s9 + $0x20] sm:$0xff] %v260_v4  ;;  %263 = vst [vmem:[%s186_s9 + $0x28] sm:$0xff] %v262_v5  ;;  %v264_v6 = vld [vmem:[%s895_s8 + $0x60] sm:$0xff]  ;;  %v266_v7 = vld [vmem:[%s895_s8 + $0x70] sm:$0xff] }
  0x16   : > { %v268_v8 = vld [vmem:[%s895_s8 + $0x80] sm:$0xff]  ;;  %265 = vst [vmem:[%s186_s9 + $0x30] sm:$0xff] %v264_v6  ;;  %267 = vst [vmem:[%s186_s9 + $0x38] sm:$0xff] %v266_v7  ;;  %v270_v9 = vld [vmem:[%s895_s8 + $0x90] sm:$0xff] }
  0x17   : > { %269 = vst [vmem:[%s186_s9 + $0x40] sm:$0xff] %v268_v8  ;;  %v272_v10 = vld [vmem:[%s895_s8 + $0xa0] sm:$0xff]  ;;  %v274_v11 = vld [vmem:[%s895_s8 + $0xb0] sm:$0xff]  ;;  %271 = vst [vmem:[%s186_s9 + $0x48] sm:$0xff] %v270_v9 }
  0x18   : > { %273 = vst [vmem:[%s186_s9 + $0x50] sm:$0xff] %v272_v10  ;;  %275 = vst [vmem:[%s186_s9 + $0x58] sm:$0xff] %v274_v11  ;;  %v276_v12 = vld [vmem:[%s895_s8 + $0xc0] sm:$0xff]  ;;  %v278_v13 = vld [vmem:[%s895_s8 + $0xd0] sm:$0xff] }
  0x19   : > { %v280_v14 = vld [vmem:[%s895_s8 + $0xe0] sm:$0xff]  ;;  %277 = vst [vmem:[%s186_s9 + $0x60] sm:$0xff] %v276_v12  ;;  %279 = vst [vmem:[%s186_s9 + $0x68] sm:$0xff] %v278_v13  ;;  %v282_v15 = vld [vmem:[%s895_s8 + $0xf0] sm:$0xff] }
  0x1a   : > { %281 = vst [vmem:[%s186_s9 + $0x70] sm:$0xff] %v280_v14  ;;  %v284_v16 = vld [vmem:[%s895_s8 + $0x100] sm:$0xff]  ;;  %v286_v17 = vld [vmem:[%s895_s8 + $0x110] sm:$0xff]  ;;  %283 = vst [vmem:[%s186_s9 + $0x78] sm:$0xff] %v282_v15 }
  0x1b   : > { %285 = vst [vmem:[%s186_s9 + $0x80] sm:$0xff] %v284_v16  ;;  %287 = vst [vmem:[%s186_s9 + $0x88] sm:$0xff] %v286_v17 }
  0x1c PF: > { %293 = sbr.rel (!%p879_p4) target bundleno = 34 (0x22), region = 70  ;;  %s295_s10 = sand.u32 (%p879_p4), 1, %s812_s19  }
  0x1d   : > { %s733_s11 = sshll.u32 (%p879_p4), %s816_s20, 4  ;;  %s700_s12 = sshll.u32 (%p879_p4), %s295_s10, 5 }
  0x1e   : > { %s300_s15 = scalar_lea.vmem (%p879_p4), %s988_s4, %s733_s11  ;;  %s297_s16 = scalar_lea.vmem (%p879_p4), [#allocation3], %s700_s12 }
  0x1f   : > { %v313_v18 = vld [vmem:[%s300_s15] sm:$0xff] (%p879_p4)  ;;  %v315_v19 = vld [vmem:[%s300_s15 + $0x8] sm:$0xff] (%p879_p4) }
  0x20   : > { %v317_v20 = vld [vmem:[%s300_s15 + $0x20] sm:$0xff] (%p879_p4)  ;;  %314 = vst [vmem:[%s297_s16] sm:$0xff] (%p879_p4), %v313_v18  ;;  %316 = vst [vmem:[%s297_s16 + $0x8] sm:$0xff] (%p879_p4), %v315_v19  ;;  %v319_v21 = vld [vmem:[%s300_s15 + $0x28] sm:$0xff] (%p879_p4) }
  0x21   : > { %318 = vst [vmem:[%s297_s16 + $0x10] sm:$0xff] %v317_v20  ;;  %320 = vst [vmem:[%s297_s16 + $0x18] sm:$0xff] %v319_v21 }
  0x22 PF: > { %p703_p7 = scmp.ge.s32.totalorder %s816_s20, 1  ;;  %p325_p8 = scmp.lt.s32.totalorder %s816_s20, 3 }
  0x24   : > { %p326_p9 = pnand %p703_p7, %p325_p8 }
  0x25   : > { %s332_s17 = sand.u32 (!%p326_p9), 1, %s808_s18  }
  0x26   : > { %329 = sbr.rel (%p326_p9) target bundleno = 299 (0x12b), region = 93  ;;  %s704_s14 = sshll.u32 (!%p326_p9), %s332_s17, 5 }
  0x27   : > { %s736_s23 = smul.u32 (!%p326_p9), 144, %s332_s17  ;;  %s341_s15 = scalar_lea.vmem (!%p326_p9), [#allocation3], %s704_s14 }
  0x28   : > { %s368_s18 = scalar_lea.vmem (!%p326_p9), [#allocation4], %s704_s14 }
  0x29   : > { %s942_s11 = scalar_lea.vmem (!%p326_p9), [#allocation2], %s736_s23 }
  0x2b   : > { %vm492_vm0 = vcmask 130048   ;;  %v793_v22 = vld [vmem:[%s984_s0 + $0x4] ss:$8 sps:$4 sm:$0xff]   ;;  %v818_v25 = vmov 0   ;;  %v766_v29 = vld [vmem:[%s942_s11 + $0x70] ss:$8 sps:$4 sm:$0xff]  }
  0x2c   : > { %v539_v23 = vld [vmem:[%s986_s2] sm:$0xff]  ;;  %762 = vset.pattern.permute.xlu0 %v818_v25  ;;  %763 = vset.pattern.permute.xlu1 %v818_v25  ;;  %v540_v26 = vld [vmem:[%s986_s2 + $0x8] sm:$0xff]  ;;  %v573_v62 = vld [vmem:[%s341_s15 + $0x10] sm:$0xff]  ;;  %s734_s16 = sshll.u32 (%p883_p5), %s694_s21, 4 }
  0x2d   : > { %v555_v24 = vld [vmem:[%s987_s3] sm:$0xff]  ;;  %726 = vmatprep.mubr.msk.bf16.mxu0 %vm492_vm0, %v793_v22  ;;  %543 = vperm.xlu0 %762, %v539_v23   ;;  %v556_v27 = vld [vmem:[%s987_s3 + $0x8] sm:$0xff]  ;;  %v574_v4 = vld [vmem:[%s341_s15 + $0x18] sm:$0xff]  ;;  %s596_s24 = scalar_lea.vmem (%p883_p5), %s989_s5, %s734_s16 }
  0x2e   : > { %v764_v28 = vld [vmem:[%s942_s11 + $0x74] ss:$8 sps:$4 sm:$0xff]   ;;  %559 = vperm.xlu1 %763, %v555_v24   ;;  %v767_v30 = vld [vmem:[%s942_s11 + $0x64] ss:$8 sps:$4 sm:$0xff]   ;;  %v769_v31 = vld [vmem:[%s942_s11 + $0x60] ss:$8 sps:$4 sm:$0xff]  }
  0x2f   : > { %496 = vmatprep.subr.bf16.mxu0 %v764_v28  ;;  %v770_v32 = vld [vmem:[%s942_s11 + $0x54] ss:$8 sps:$4 sm:$0xff]   ;;  %v772_v33 = vld [vmem:[%s942_s11 + $0x50] ss:$8 sps:$4 sm:$0xff]   ;;  %v773_v34 = vld [vmem:[%s942_s11 + $0x44] ss:$8 sps:$4 sm:$0xff]  }
  0x30   : > { %497 = vmatpush1.bf16.msra.mxu0 %v766_v29  ;;  %v775_v35 = vld [vmem:[%s942_s11 + $0x40] ss:$8 sps:$4 sm:$0xff]   ;;  %v776_v36 = vld [vmem:[%s942_s11 + $0x34] ss:$8 sps:$4 sm:$0xff]   ;;  %v778_v37 = vld [vmem:[%s942_s11 + $0x30] ss:$8 sps:$4 sm:$0xff]  }
  0x31   : > { %548 = vperm.xlu0 %762, %v540_v26   ;;  %498 = vmatprep.subr.bf16.mxu0 %v767_v30  ;;  %v779_v38 = vld [vmem:[%s942_s11 + $0x24] ss:$8 sps:$4 sm:$0xff]   ;;  %v781_v39 = vld [vmem:[%s942_s11 + $0x20] ss:$8 sps:$4 sm:$0xff]   ;;  %v782_v40 = vld [vmem:[%s942_s11 + $0x14] ss:$8 sps:$4 sm:$0xff]  }
  0x32   : > { %564 = vperm.xlu1 %763, %v556_v27   ;;  %v784_v41 = vld [vmem:[%s942_s11 + $0x10] ss:$8 sps:$4 sm:$0xff]   ;;  %v785_v42 = vld [vmem:[%s942_s11 + $0x4] ss:$8 sps:$4 sm:$0xff]   ;;  %v787_v43 = vld [vmem:[%s942_s11] ss:$8 sps:$4 sm:$0xff]  }
  0x33   : > { %v788_v44 = vld [vmem:[%s942_s11 + $0x84] ss:$8 sps:$4 sm:$0xff]   ;;  %v790_v45 = vld [vmem:[%s942_s11 + $0x80] ss:$8 sps:$4 sm:$0xff]  }
  0x34   : > { %499 = vmatpush1.bf16.msra.mxu0 %v769_v31  ;;  %v791_v46 = vld [vmem:[%s984_s0] ss:$8 sps:$4 sm:$0xff]  }
  0x35   : > { %500 = vmatprep.subr.bf16.mxu0 %v770_v32  ;;  %v571_v51 = vld [vmem:[%s341_s15] sm:$0xff]  ;;  %v572_v56 = vld [vmem:[%s341_s15 + $0x8] sm:$0xff] }
  0x38   : > { %501 = vmatpush1.bf16.msra.mxu0 %v772_v33 }
  0x39   : > { %502 = vmatprep.subr.bf16.mxu0 %v773_v34 }
  0x3c   : > { %503 = vmatpush1.bf16.msra.mxu0 %v775_v35 }
  0x3d   : > { %504 = vmatprep.subr.bf16.mxu0 %v776_v36 }
  0x40   : > { %505 = vmatpush1.bf16.msra.mxu0 %v778_v37 }
  0x41   : > { %506 = vmatprep.subr.bf16.mxu0 %v779_v38 }
  0x44   : > { %507 = vmatpush1.bf16.msra.mxu0 %v781_v39 }
  0x45   : > { %508 = vmatprep.subr.bf16.mxu0 %v782_v40 }
  0x48   : > { %509 = vmatpush1.bf16.msra.mxu0 %v784_v41 }
  0x49   : > { %510 = vmatprep.subr.bf16.mxu0 %v785_v42 }
  0x4c   : > { %511 = vmatpush1.bf16.msra.mxu0 %v787_v43 }
  0x4d   : > { %526 = vmatprep.subr.bf16.mxu0 %v788_v44 }
  0x50   : > { %527 = vmatpush2.bf16.msra.mxu0 %v790_v45 }
  0x53   : > { %529 = vmatmul.mubr.bf16.vlgmr.msra.gmra.mxu0 %v791_v46 }
  0xa8   : > { %v544_v47 = vpop.permute.xlu0 %543 }
  0xa9   : > { %v560_v48 = vpop.permute.xlu1 %559 }
  0xac   : > { %v549_v55 = vpop.permute.xlu0 %548 }
  0xad   : > { %v565_v61 = vpop.permute.xlu1 %564 }
 0x113   : > { %v530_v49 = vpop.f32.mrf.mxu0 }
 0x114   : > { %v551_v50 = vmul.f32 %v544_v47, %v530_v49 }
 0x115   : > { %v532_v52 = vpop.f32.mrf.mxu0 }
 0x116   : > { %v567_v53 = vadd.f32 %v560_v48, %v551_v50  ;;  %v552_v54 = vmul.f32 %v544_v47, %v532_v52 }
 0x117   : > { %v534_v57 = vpop.f32.mrf.mxu0 }
 0x118   : > { %v575_v58 = vadd.f32 %v571_v51, %v567_v53  ;;  %v568_v59 = vadd.f32 %v560_v48, %v552_v54  ;;  %v553_v60 = vmul.f32 %v549_v55, %v534_v57 }
 0x119   : > { %v536_v63 = vpop.f32.mrf.mxu0 }
 0x11a   : > { %v579_v0 = vmax.f32 %v575_v58, 0.0  ;;  %v576_v1 = vadd.f32 %v572_v56, %v568_v59  ;;  %v569_v2 = vadd.f32 %v565_v61, %v553_v60  ;;  %v554_v3 = vmul.f32 %v549_v55, %v536_v63 }
 0x11c   : > { %583 = vst [vmem:[%s368_s18] sm:$0xff] %v579_v0  ;;  %v580_v5 = vmax.f32 %v576_v1, 0.0  ;;  %v577_v6 = vadd.f32 %v573_v62, %v569_v2  ;;  %v570_v7 = vadd.f32 %v565_v61, %v554_v3 }
 0x11e   : > { %584 = vst [vmem:[%s368_s18 + $0x8] sm:$0xff] %v580_v5  ;;  %v581_v8 = vmax.f32 %v577_v6, 0.0  ;;  %v578_v9 = vadd.f32 %v574_v4, %v570_v7  ;;  %593 = sbr.rel (!%p883_p5) target bundleno = 299 (0x12b), region = 105 }
 0x120   : > { %585 = vst [vmem:[%s368_s18 + $0x10] sm:$0xff] %v581_v8  ;;  %v582_v10 = vmax.f32 %v578_v9, 0.0 }
 0x122   : > { %586 = vst [vmem:[%s368_s18 + $0x18] sm:$0xff] %v582_v10 }
 0x123   : > { %v609_v11 = vld [vmem:[%s368_s18] sm:$0xff] }
 0x124   : > { %610 = vst [vmem:[%s596_s24] sm:$0xff] %v609_v11 }
 0x125   : > { %v611_v12 = vld [vmem:[%s368_s18 + $0x8] sm:$0xff] }
 0x126   : > { %612 = vst [vmem:[%s596_s24 + $0x8] sm:$0xff] %v611_v12 }
 0x127   : > { %v613_v13 = vld [vmem:[%s368_s18 + $0x10] sm:$0xff] }
 0x128   : > { %614 = vst [vmem:[%s596_s24 + $0x20] sm:$0xff] %v613_v13 }
 0x129   : > { %v615_v14 = vld [vmem:[%s368_s18 + $0x18] sm:$0xff] }
 0x12a   : > { %616 = vst [vmem:[%s596_s24 + $0x28] sm:$0xff] %v615_v14 }
 0x12b PF: > { %p12_p10 = scmp.ge.s32.totalorder %s866_s22, 4   ;;  %s992_s18 = smov %s812_s19 }
 0x12c   : > { %s993_s19 = smov %s877_s25  ;;  %s994_s20 = smov %s866_s22 }
 0x12d   :  { %14 = sbr.rel (!%p12_p10) target bundleno = 2 (0x2), region = 167 }

// kernel: custom_resnet_forward.11
= control target key start
LH: loop header
LB: loop body
LE: loop exit
PB: predicated region body
PF: predicated region fallthrough
CT: control target
= control target key end

     0   :  { %v287_v0 = vmov 0   ;;  %vm112_vm0 = vcmask 130048   ;;  %s408_s1 = inlined_call_operand.vmem [shape: bf16[144,128], index: 1, kind: input, shape index: {}]   ;;  %s409_s0 = inlined_call_operand.vmem [shape: bf16[32,144], index: 0, kind: input, shape index: {}]   ;;  %s410_s2 = inlined_call_operand.vmem [shape: f32[32,1], index: 2, kind: input, shape index: {}]   ;;  %s411_s3 = inlined_call_operand.vmem [shape: f32[32,1], index: 3, kind: input, shape index: {}]   ;;  %s412_s4 = inlined_call_operand.vmem [shape: f32[32,128], index: 4, kind: output, shape index: {}]  }
   0x1   :  { %119 = vmatprep.subr.bf16.mxu0 %v287_v0  ;;  %251 = vmatprep.subr.bf16.mxu1 %v287_v0  ;;  %v272_v1 = vld [vmem:[%s408_s1 + $0x38] sm:$0xff]   ;;  %v273_v2 = vld [vmem:[%s408_s1 + $0x30] sm:$0xff]   ;;  %v274_v3 = vld [vmem:[%s408_s1 + $0x28] sm:$0xff]  }
   0x2   :  { %271 = vset.pattern.permute.xlu1 %v287_v0  ;;  %270 = vset.pattern.permute.xlu0 %v287_v0  ;;  %v275_v4 = vld [vmem:[%s408_s1 + $0x20] sm:$0xff]   ;;  %v286_v6 = vld [vmem:[%s409_s0 + $0x14] ss:$8 sps:$4 sm:$0xff]   ;;  %v169_v11 = vld [vmem:[%s410_s2 + $0x8] sm:$0xff] }
   0x3   :  { %120 = vmatpush1.bf16.msra.mxu0 %v272_v1  ;;  %260 = vmatpush1.bf16.msra.mxu1 %v272_v1  ;;  %v283_v5 = vld [vmem:[%s409_s0 + $0x4] ss:$8 sps:$4 sm:$0xff]   ;;  %v170_v7 = vld [vmem:[%s410_s2 + $0x10] sm:$0xff]  ;;  %v171_v9 = vld [vmem:[%s410_s2 + $0x18] sm:$0xff] }
   0x4   :  { %121 = vmatprep.subr.bf16.mxu0 %v287_v0  ;;  %252 = vmatprep.subr.bf16.mxu1 %v287_v0  ;;  %v168_v8 = vld [vmem:[%s410_s2] sm:$0xff]  ;;  %v276_v10 = vld [vmem:[%s408_s1 + $0x18] sm:$0xff]   ;;  %v197_v12 = vld [vmem:[%s411_s3 + $0x8] sm:$0xff] }
   0x5   :  { %249 = vmatprep.mubr.msk.bf16.mxu0 %vm112_vm0, %v283_v5  ;;  %184 = vperm.xlu1 %271, %v170_v7   ;;  %v277_v13 = vld [vmem:[%s408_s1 + $0x10] sm:$0xff]   ;;  %v196_v14 = vld [vmem:[%s411_s3] sm:$0xff]  ;;  %v199_v15 = vld [vmem:[%s411_s3 + $0x18] sm:$0xff] }
   0x6   :  { %250 = vmatprep.mubr.msk.bf16.mxu1 %vm112_vm0, %v286_v6  ;;  %174 = vperm.xlu0 %270, %v168_v8   ;;  %v278_v16 = vld [vmem:[%s408_s1 + $0x8] sm:$0xff]   ;;  %v198_v17 = vld [vmem:[%s411_s3 + $0x10] sm:$0xff]  ;;  %v279_v18 = vld [vmem:[%s408_s1] sm:$0xff]  }
   0x7   :  { %122 = vmatpush1.bf16.msra.mxu0 %v273_v2  ;;  %261 = vmatpush1.bf16.msra.mxu1 %v273_v2  ;;  %v280_v19 = vld [vmem:[%s408_s1 + $0x40] sm:$0xff]   ;;  %v284_v21 = vld [vmem:[%s409_s0 + $0x10] ss:$8 sps:$4 sm:$0xff]  }
   0x8   :  { %123 = vmatprep.subr.bf16.mxu0 %v287_v0  ;;  %253 = vmatprep.subr.bf16.mxu1 %v287_v0  ;;  %v281_v20 = vld [vmem:[%s409_s0] ss:$8 sps:$4 sm:$0xff]  }
   0x9   :  { %189 = vperm.xlu1 %271, %v171_v9  }
   0xa   :  { %179 = vperm.xlu0 %270, %v169_v11  }
   0xb   :  { %124 = vmatpush1.bf16.msra.mxu0 %v274_v3  ;;  %262 = vmatpush1.bf16.msra.mxu1 %v274_v3 }
   0xc   :  { %125 = vmatprep.subr.bf16.mxu0 %v287_v0  ;;  %254 = vmatprep.subr.bf16.mxu1 %v287_v0 }
   0xd   :  { %207 = vperm.xlu1 %271, %v197_v12  }
   0xe   :  { %202 = vperm.xlu0 %270, %v196_v14  }
   0xf   :  { %126 = vmatpush1.bf16.msra.mxu0 %v275_v4  ;;  %263 = vmatpush1.bf16.msra.mxu1 %v275_v4 }
  0x10   :  { %127 = vmatprep.subr.bf16.mxu0 %v287_v0  ;;  %255 = vmatprep.subr.bf16.mxu1 %v287_v0 }
  0x11   :  { %217 = vperm.xlu1 %271, %v199_v15  }
  0x12   :  { %212 = vperm.xlu0 %270, %v198_v17  }
  0x13   :  { %128 = vmatpush1.bf16.msra.mxu0 %v276_v10  ;;  %264 = vmatpush1.bf16.msra.mxu1 %v276_v10 }
  0x14   :  { %129 = vmatprep.subr.bf16.mxu0 %v287_v0  ;;  %256 = vmatprep.subr.bf16.mxu1 %v287_v0 }
  0x17   :  { %130 = vmatpush1.bf16.msra.mxu0 %v277_v13  ;;  %265 = vmatpush1.bf16.msra.mxu1 %v277_v13 }
  0x18   :  { %131 = vmatprep.subr.bf16.mxu0 %v287_v0  ;;  %257 = vmatprep.subr.bf16.mxu1 %v287_v0 }
  0x1b   :  { %132 = vmatpush1.bf16.msra.mxu0 %v278_v16  ;;  %266 = vmatpush1.bf16.msra.mxu1 %v278_v16 }
  0x1c   :  { %133 = vmatprep.subr.bf16.mxu0 %v287_v0  ;;  %258 = vmatprep.subr.bf16.mxu1 %v287_v0 }
  0x1f   :  { %134 = vmatpush1.bf16.msra.mxu0 %v279_v18  ;;  %267 = vmatpush1.bf16.msra.mxu1 %v279_v18 }
  0x20   :  { %149 = vmatprep.subr.bf16.mxu0 %v287_v0  ;;  %259 = vmatprep.subr.bf16.mxu1 %v287_v0 }
  0x23   :  { %150 = vmatpush2.bf16.msra.mxu0 %v280_v19  ;;  %268 = vmatpush2.bf16.msra.mxu1 %v280_v19 }
  0x26   :  { %152 = vmatmul.mubr.bf16.vlgmr.msra.gmra.mxu0 %v281_v20  ;;  %160 = vmatmul.mubr.bf16.vlgmr.msra.gmra.mxu1 %v284_v21 }
  0x80   :  { %v185_v23 = vpop.permute.xlu1 %184 }
  0x81   :  { %v175_v22 = vpop.permute.xlu0 %174 }
  0x84   :  { %v190_v25 = vpop.permute.xlu1 %189 }
  0x85   :  { %v180_v24 = vpop.permute.xlu0 %179 }
  0x88   :  { %v208_v27 = vpop.permute.xlu1 %207 }
  0x89   :  { %v203_v26 = vpop.permute.xlu0 %202 }
  0x8c   :  { %v218_v39 = vpop.permute.xlu1 %217 }
  0x8d   :  { %v213_v30 = vpop.permute.xlu0 %212 }
  0xe6   :  { %v153_v28 = vpop.f32.mrf.mxu0  ;;  %v161_v29 = vpop.f32.mrf.mxu1 }
  0xe7   :  { %v192_v31 = vmul.f32 %v175_v22, %v153_v28  ;;  %v194_v32 = vmul.f32 %v185_v23, %v161_v29 }
  0xe8   :  { %v155_v33 = vpop.f32.mrf.mxu0  ;;  %v163_v34 = vpop.f32.mrf.mxu1 }
  0xe9   :  { %v220_v35 = vadd.f32 %v203_v26, %v192_v31  ;;  %v222_v36 = vadd.f32 %v213_v30, %v194_v32 }
  0xea   :  { %v156_v37 = vpop.f32.mrf.mxu0  ;;  %v164_v38 = vpop.f32.mrf.mxu1 }
  0xeb   :  { %v224_v40 = vmax.f32 %v220_v35, 0.0  ;;  %v226_v41 = vmax.f32 %v222_v36, 0.0  ;;  %v193_v42 = vmul.f32 %v180_v24, %v156_v37  ;;  %v195_v43 = vmul.f32 %v190_v25, %v164_v38 }
  0xec   :  { %v158_v44 = vpop.f32.mrf.mxu0  ;;  %v166_v45 = vpop.f32.mrf.mxu1 }
  0xed   :  { %228 = vst [vmem:[%s412_s4] sm:$0xff] %v224_v40  ;;  %230 = vst [vmem:[%s412_s4 + $0x10] sm:$0xff] %v226_v41  ;;  %v221_v46 = vadd.f32 %v208_v27, %v193_v42  ;;  %v223_v47 = vadd.f32 %v218_v39, %v195_v43 }
  0xef   :  { %v225_v48 = vmax.f32 %v221_v46, 0.0  ;;  %v227_v49 = vmax.f32 %v223_v47, 0.0 }
  0xf1   :  { %229 = vst [vmem:[%s412_s4 + $0x8] sm:$0xff] %v225_v48  ;;  %231 = vst [vmem:[%s412_s4 + $0x18] sm:$0xff] %v227_v49 }

// kernel: custom_resnet_forward.10
= control target key start
LH: loop header
LB: loop body
LE: loop exit
PB: predicated region body
PF: predicated region fallthrough
CT: control target
= control target key end

     0   :  { %vm40_vm0 = vcmask 130048   ;;  %v180_v1 = vmov 0   ;;  %s253_s1 = inlined_call_operand.vmem [shape: bf16[16,128], index: 1, kind: input, shape index: {}]   ;;  %s254_s0 = inlined_call_operand.vmem [shape: bf16[32,16], index: 0, kind: input, shape index: {}]   ;;  %s255_s2 = inlined_call_operand.vmem [shape: f32[32,1], index: 2, kind: input, shape index: {}]   ;;  %s256_s3 = inlined_call_operand.vmem [shape: f32[32,1], index: 3, kind: input, shape index: {}]   ;;  %s257_s4 = inlined_call_operand.vmem [shape: f32[32,128], index: 4, kind: output, shape index: {}]  }
   0x1   :  { %v177_v0 = vld [vmem:[%s253_s1] sm:$0xff]   ;;  %176 = vset.pattern.permute.xlu1 %v180_v1  ;;  %175 = vset.pattern.permute.xlu0 %v180_v1  ;;  %v179_v3 = vld [vmem:[%s254_s0 + $0x8] sm:$0xff]   ;;  %v98_v4 = vld [vmem:[%s255_s2 + $0x10] sm:$0xff] }
   0x2   :  { %v178_v2 = vld [vmem:[%s254_s0] sm:$0xff]   ;;  %168 = vmatprep.subr.bf16.mxu0 %v177_v0  ;;  %112 = vperm.xlu1 %176, %v98_v4   ;;  %v99_v6 = vld [vmem:[%s255_s2 + $0x18] sm:$0xff]  ;;  %v97_v7 = vld [vmem:[%s255_s2 + $0x8] sm:$0xff] }
   0x3   :  { %169 = vmatpush3.bf16.msra.mxu0 %v177_v0  ;;  %170 = vmatprep.mubr.msk.bf16.mxu0 %vm40_vm0, %v178_v2  ;;  %v96_v5 = vld [vmem:[%s255_s2] sm:$0xff]  ;;  %v125_v8 = vld [vmem:[%s256_s3 + $0x8] sm:$0xff]  ;;  %v127_v10 = vld [vmem:[%s256_s3 + $0x18] sm:$0xff] }
   0x4   :  { %102 = vperm.xlu0 %175, %v96_v5   ;;  %v124_v9 = vld [vmem:[%s256_s3] sm:$0xff]  ;;  %v126_v11 = vld [vmem:[%s256_s3 + $0x10] sm:$0xff] }
   0x6   :  { %171 = vmatmul.mubr.msk.bf16.vlgmr.msra.gmra.mxu0 %vm40_vm0, %v179_v3  ;;  %117 = vperm.xlu1 %176, %v99_v6  }
   0x8   :  { %107 = vperm.xlu0 %175, %v97_v7  }
   0xa   :  { %135 = vperm.xlu1 %176, %v125_v8  }
   0xc   :  { %130 = vperm.xlu0 %175, %v124_v9  }
   0xe   :  { %145 = vperm.xlu1 %176, %v127_v10  }
  0x10   :  { %140 = vperm.xlu0 %175, %v126_v11  }
  0x7d   :  { %v113_v13 = vpop.permute.xlu1 %112 }
  0x7f   :  { %v103_v12 = vpop.permute.xlu0 %102 }
  0x81   :  { %v118_v15 = vpop.permute.xlu1 %117 }
  0x83   :  { %v108_v14 = vpop.permute.xlu0 %107 }
  0x85   :  { %v136_v17 = vpop.permute.xlu1 %135 }
  0x87   :  { %v131_v16 = vpop.permute.xlu0 %130 }
  0x89   :  { %v146_v27 = vpop.permute.xlu1 %145 }
  0x8b   :  { %v141_v20 = vpop.permute.xlu0 %140 }
  0xc6   :  { %v172_v18 = vpop.f32.mrf.mxu0 }
  0xc7   :  { %v122_v19 = vmul.f32 %v172_v18, %v113_v13 }
  0xc8   :  { %v81_v21 = vpop.f32.mrf.mxu0 }
  0xc9   :  { %v150_v22 = vadd.f32 %v141_v20, %v122_v19  ;;  %v120_v23 = vmul.f32 %v103_v12, %v81_v21 }
  0xca   :  { %v173_v24 = vpop.f32.mrf.mxu0 }
  0xcb   :  { %154 = vst [vmem:[%s257_s4 + $0x10] sm:$0xff] %v150_v22  ;;  %v148_v25 = vadd.f32 %v131_v16, %v120_v23  ;;  %v123_v26 = vmul.f32 %v173_v24, %v118_v15 }
  0xcc   :  { %v84_v28 = vpop.f32.mrf.mxu0 }
  0xcd   :  { %152 = vst [vmem:[%s257_s4] sm:$0xff] %v148_v25  ;;  %v151_v29 = vadd.f32 %v146_v27, %v123_v26  ;;  %v121_v30 = vmul.f32 %v108_v14, %v84_v28 }
  0xcf   :  { %155 = vst [vmem:[%s257_s4 + $0x18] sm:$0xff] %v151_v29  ;;  %v149_v31 = vadd.f32 %v136_v17, %v121_v30 }
  0xd1   :  { %153 = vst [vmem:[%s257_s4 + $0x8] sm:$0xff] %v149_v31 }

// kernel: custom_resnet_forward.12
= control target key start
LH: loop header
LB: loop body
LE: loop exit
PB: predicated region body
PF: predicated region fallthrough
CT: control target
= control target key end

     0   :  { %v479_v1 = vmov 0   ;;  %vm203_vm0 = vcmask 261120   ;;  %s632_s1 = inlined_call_operand.vmem [shape: bf16[288,128], index: 1, kind: input, shape index: {}]   ;;  %s633_s0 = inlined_call_operand.vmem [shape: bf16[32,288], index: 0, kind: input, shape index: {}]   ;;  %s634_s2 = inlined_call_operand.vmem [shape: f32[32,1], index: 2, kind: input, shape index: {}]   ;;  %s635_s3 = inlined_call_operand.vmem [shape: f32[32,1], index: 3, kind: input, shape index: {}]   ;;  %s636_s4 = inlined_call_operand.vmem [shape: f32[32,128], index: 4, kind: input, shape index: {}]   ;;  %s637_s5 = inlined_call_operand.vmem [shape: f32[32,128], index: 5, kind: output, shape index: {}]  }
   0x1   :  { %v453_v0 = vld [vmem:[%s632_s1 + $0x78] sm:$0xff]   ;;  %452 = vset.pattern.permute.xlu1 %v479_v1  ;;  %451 = vset.pattern.permute.xlu0 %v479_v1  ;;  %v455_v3 = vld [vmem:[%s632_s1 + $0x70] sm:$0xff]   ;;  %v457_v5 = vld [vmem:[%s632_s1 + $0x68] sm:$0xff]  }
   0x2   :  { %v454_v2 = vld [vmem:[%s632_s1 + $0x38] sm:$0xff]   ;;  %410 = vmatprep.subr.bf16.mxu0 %v453_v0  ;;  %v456_v4 = vld [vmem:[%s632_s1 + $0x30] sm:$0xff]   ;;  %v458_v6 = vld [vmem:[%s632_s1 + $0x28] sm:$0xff]  }
   0x3   :  { %411 = vmatpush3.bf16.msra.mxu0 %v454_v2  ;;  %v459_v7 = vld [vmem:[%s632_s1 + $0x60] sm:$0xff]   ;;  %v461_v9 = vld [vmem:[%s632_s1 + $0x58] sm:$0xff]   ;;  %v467_v10 = vld [vmem:[%s632_s1 + $0x88] sm:$0xff]  }
   0x4   :  { %412 = vmatprep.subr.bf16.mxu0 %v455_v3  ;;  %v460_v8 = vld [vmem:[%s632_s1 + $0x20] sm:$0xff]   ;;  %v462_v11 = vld [vmem:[%s632_s1 + $0x18] sm:$0xff]   ;;  %v463_v12 = vld [vmem:[%s632_s1 + $0x50] sm:$0xff]   ;;  %442 = vmatprep.subr.bf16.mxu1 %v467_v10 }
   0x5   :  { %v464_v13 = vld [vmem:[%s632_s1 + $0x10] sm:$0xff]   ;;  %443 = vmatpush3.bf16.msra.mxu1 %v467_v10  ;;  %v470_v14 = vld [vmem:[%s632_s1 + $0x80] sm:$0xff]   ;;  %v465_v15 = vld [vmem:[%s632_s1 + $0x48] sm:$0xff]  }
   0x6   :  { %444 = vmatprep.subr.bf16.mxu1 %v470_v14  ;;  %v473_v16 = vld [vmem:[%s633_s0 + $0x4] ss:$12 sps:$4 sm:$0xff]   ;;  %v474_v17 = vld [vmem:[%s633_s0 + $0x8] ss:$12 sps:$4 sm:$0xff]   ;;  %v475_v18 = vld [vmem:[%s633_s0 + $0x20] ss:$12 sps:$4 sm:$0xff]  }
   0x7   :  { %413 = vmatpush3.bf16.msra.mxu0 %v456_v4  ;;  %242 = vmatprep.mubr.bf16.mxu0 %v473_v16  ;;  %v310_v19 = vld [vmem:[%s634_s2 + $0x10] sm:$0xff]  ;;  %v466_v20 = vld [vmem:[%s632_s1 + $0x8] sm:$0xff]   ;;  %v308_v21 = vld [vmem:[%s634_s2] sm:$0xff] }
   0x8   :  { %414 = vmatprep.subr.bf16.mxu0 %v457_v5  ;;  %446 = vmatprep.mubr.msk.bf16.mxu1 %vm203_vm0, %v474_v17  ;;  %v468_v22 = vld [vmem:[%s632_s1 + $0x40] sm:$0xff]   ;;  %v311_v23 = vld [vmem:[%s634_s2 + $0x18] sm:$0xff]  ;;  %v309_v24 = vld [vmem:[%s634_s2 + $0x8] sm:$0xff] }
   0x9   :  { %445 = vmatpush3.bf16.msra.mxu1 %v470_v14  ;;  %324 = vperm.xlu1 %452, %v310_v19   ;;  %v469_v25 = vld [vmem:[%s632_s1] sm:$0xff]   ;;  %v337_v26 = vld [vmem:[%s635_s3 + $0x8] sm:$0xff]  ;;  %v339_v30 = vld [vmem:[%s635_s3 + $0x18] sm:$0xff] }
   0xa   :  { %314 = vperm.xlu0 %451, %v308_v21   ;;  %v471_v27 = vld [vmem:[%s633_s0] ss:$12 sps:$4 sm:$0xff]   ;;  %v476_v29 = vld [vmem:[%s633_s0 + $0x1c] ss:$12 sps:$4 sm:$0xff]   ;;  %v338_v31 = vld [vmem:[%s635_s3 + $0x10] sm:$0xff] }
   0xb   :  { %415 = vmatpush3.bf16.msra.mxu0 %v458_v6  ;;  %v336_v28 = vld [vmem:[%s635_s3] sm:$0xff]  ;;  %v365_v59 = vld [vmem:[%s636_s4 + $0x8] sm:$0xff]  ;;  %v366_v5 = vld [vmem:[%s636_s4 + $0x10] sm:$0xff] }
   0xc   :  { %416 = vmatprep.subr.bf16.mxu0 %v459_v7  ;;  %447 = vmatmul.mubr.msk.bf16.vlgmr.msra.gmra.mxu1 %vm203_vm0, %v475_v18  ;;  %v478_v32 = vld [vmem:[%s633_s0 + $0x18] ss:$12 sps:$4 sm:$0xff]  }
   0xd   :  { %329 = vperm.xlu1 %452, %v311_v23   ;;  %v364_v50 = vld [vmem:[%s636_s4] sm:$0xff] }
   0xe   :  { %319 = vperm.xlu0 %451, %v309_v24  }
   0xf   :  { %417 = vmatpush3.bf16.msra.mxu0 %v460_v8 }
  0x10   :  { %418 = vmatprep.subr.bf16.mxu0 %v461_v9 }
  0x11   :  { %347 = vperm.xlu1 %452, %v337_v26  }
  0x12   :  { %342 = vperm.xlu0 %451, %v336_v28  }
  0x13   :  { %419 = vmatpush3.bf16.msra.mxu0 %v462_v11 }
  0x14   :  { %420 = vmatprep.subr.bf16.mxu0 %v463_v12  ;;  %v367_v12 = vld [vmem:[%s636_s4 + $0x18] sm:$0xff] }
  0x15   :  { %357 = vperm.xlu1 %452, %v339_v30  }
  0x16   :  { %352 = vperm.xlu0 %451, %v338_v31  }
  0x17   :  { %421 = vmatpush3.bf16.msra.mxu0 %v464_v13 }
  0x18   :  { %422 = vmatprep.subr.bf16.mxu0 %v465_v15 }
  0x1b   :  { %423 = vmatpush3.bf16.msra.mxu0 %v466_v20 }
  0x1c   :  { %424 = vmatprep.subr.bf16.mxu0 %v468_v22 }
  0x1f   :  { %425 = vmatpush3.bf16.msra.mxu0 %v469_v25 }
  0x22   :  { %243 = vmatmul.mubr.bf16.vlgmr.msra.gmra.mxu0 %v471_v27 }
  0x23   :  { %250 = vmatprep.mubr.bf16.mxu0 %v476_v29 }
  0x2a   :  { %251 = vmatmul.mubr.bf16.gmra.mxu0 %v478_v32 }
  0x84   :  { %v325_v36 = vpop.permute.xlu1 %324 }
  0x85   :  { %v315_v34 = vpop.permute.xlu0 %314 }
  0x88   :  { %v330_v43 = vpop.permute.xlu1 %329 }
  0x89   :  { %v320_v38 = vpop.permute.xlu0 %319 }
  0x8c   :  { %v348_v58 = vpop.permute.xlu1 %347 }
  0x8d   :  { %v343_v49 = vpop.permute.xlu0 %342 }
  0x90   :  { %v358_v11 = vpop.permute.xlu1 %357 }
  0x91   :  { %v353_v4 = vpop.permute.xlu0 %352 }
  0xcc   :  { %v448_v33 = vpop.f32.mrf.mxu1 }
  0xce   :  { %v293_v35 = vpop.f32.mrf.mxu1 }
  0xd0   :  { %v449_v40 = vpop.f32.mrf.mxu1 }
  0xd2   :  { %v296_v46 = vpop.f32.mrf.mxu1 }
  0xe2   :  { %v426_v37 = vpop.f32.mrf.mxu0 }
  0xe4   :  { %v427_v39 = vpop.f32.mrf.mxu0 }
  0xe5   :  { %v428_v41 = vadd.f32 %v427_v39, %v426_v37 }
  0xe6   :  { %v429_v42 = vpop.f32.mrf.mxu0 }
  0xe7   :  { %v294_v44 = vadd.f32 %v428_v41, %v293_v35 }
  0xe8   :  { %v430_v45 = vpop.f32.mrf.mxu0 }
  0xe9   :  { %v332_v47 = vmul.f32 %v315_v34, %v294_v44  ;;  %v431_v48 = vadd.f32 %v430_v45, %v429_v42 }
  0xea   :  { %v432_v51 = vpop.f32.mrf.mxu0 }
  0xeb   :  { %v360_v52 = vadd.f32 %v343_v49, %v332_v47  ;;  %v297_v53 = vadd.f32 %v431_v48, %v296_v46 }
  0xec   :  { %v433_v54 = vpop.f32.mrf.mxu0 }
  0xed   :  { %v368_v55 = vadd.f32 %v364_v50, %v360_v52  ;;  %v333_v56 = vmul.f32 %v320_v38, %v297_v53  ;;  %v434_v57 = vadd.f32 %v433_v54, %v432_v51 }
  0xee   :  { %v435_v60 = vpop.f32.mrf.mxu0 }
  0xef   :  { %v372_v61 = vmax.f32 %v368_v55, 0.0  ;;  %v361_v62 = vadd.f32 %v348_v58, %v333_v56  ;;  %v302_v63 = vadd.f32 %v448_v33, %v434_v57 }
  0xf0   :  { %v436_v0 = vpop.f32.mrf.mxu0 }
  0xf1   :  { %376 = vst [vmem:[%s637_s5] sm:$0xff] %v372_v61  ;;  %v369_v1 = vadd.f32 %v365_v59, %v361_v62  ;;  %v334_v2 = vmul.f32 %v325_v36, %v302_v63  ;;  %v437_v3 = vadd.f32 %v436_v0, %v435_v60 }
  0xf3   :  { %v373_v6 = vmax.f32 %v369_v1, 0.0  ;;  %v362_v7 = vadd.f32 %v353_v4, %v334_v2  ;;  %v305_v8 = vadd.f32 %v449_v40, %v437_v3 }
  0xf5   :  { %377 = vst [vmem:[%s637_s5 + $0x8] sm:$0xff] %v373_v6  ;;  %v370_v9 = vadd.f32 %v366_v5, %v362_v7  ;;  %v335_v10 = vmul.f32 %v330_v43, %v305_v8 }
  0xf7   :  { %v374_v13 = vmax.f32 %v370_v9, 0.0  ;;  %v363_v14 = vadd.f32 %v358_v11, %v335_v10 }
  0xf9   :  { %378 = vst [vmem:[%s637_s5 + $0x10] sm:$0xff] %v374_v13  ;;  %v371_v15 = vadd.f32 %v367_v12, %v363_v14 }
  0xfb   :  { %v375_v16 = vmax.f32 %v371_v15, 0.0 }
  0xfd   :  { %379 = vst [vmem:[%s637_s5 + $0x18] sm:$0xff] %v375_v16 }

// kernel: custom_resnet_forward.13
= control target key start
LH: loop header
LB: loop body
LE: loop exit
PB: predicated region body
PF: predicated region fallthrough
CT: control target
= control target key end

     0   :  { %vm53_vm0 = vcmask 517120   ;;  %vm524_vm1 = vcmask 261120   ;;  %vm485_vm2 = vcmask 1041409   ;;  %vm487_vm3 = vcmask 1042434   ;;  %s1037_s0 = inlined_call_operand.vmem [shape: f32[32,2,64], index: 0, kind: input, shape index: {}]   ;;  %s1038_s1 = inlined_call_operand.vmem [shape: bf16[64,32], index: 1, kind: input, shape index: {}]   ;;  %s1039_s2 = inlined_call_operand.vmem [shape: f32[64,1], index: 2, kind: input, shape index: {}]   ;;  %s1040_s4 = inlined_call_operand.vmem [shape: f32[10,1], index: 4, kind: input, shape index: {}]   ;;  %s1041_s3 = inlined_call_operand.vmem [shape: bf16[10,64], index: 3, kind: input, shape index: {}]   ;;  %s1042_s5 = inlined_call_operand.vmem [shape: f32[10,2], index: 5, kind: output, shape index: {}]  }
   0x1   :  { %v45_v0 = vld [vmem:[%s1037_s0 + $0x30] sm:$0x3]  ;;  %v37_v1 = vld [vmem:[%s1037_s0 + $0x20] sm:$0x3]  ;;  %v46_v2 = vld [vmem:[%s1037_s0 + $0x32] sm:$0x3] }
   0x2   :  { %v126_v3 = vsel %vm53_vm0, %v45_v0, 0.0  ;;  %v102_v4 = vsel %vm53_vm0, %v37_v1, 0.0  ;;  %v38_v5 = vld [vmem:[%s1037_s0 + $0x22] sm:$0x3]  ;;  %v129_v6 = vsel %vm53_vm0, %v46_v2, 0.0  ;;  %v741_v1 = vmov 0  }
   0x3   :  { %127 = vadd.xlane.f32.xlu1 %v126_v3  ;;  %103 = vadd.xlane.f32.xlu0 %v102_v4  ;;  %v105_v7 = vsel %vm53_vm0, %v38_v5, 0.0  ;;  %v47_v8 = vld [vmem:[%s1037_s0 + $0x34] sm:$0x3]  ;;  %v39_v9 = vld [vmem:[%s1037_s0 + $0x24] sm:$0x3]  ;;  %v230_v2 = vld [vmem:[%s1039_s2 + $0x38] sm:$0xff] }
   0x4   :  { %v132_v10 = vsel %vm53_vm0, %v47_v8, 0.0  ;;  %v108_v11 = vsel %vm53_vm0, %v39_v9, 0.0  ;;  %v48_v12 = vld [vmem:[%s1037_s0 + $0x36] sm:$0x3]  ;;  %v40_v13 = vld [vmem:[%s1037_s0 + $0x26] sm:$0x3]  ;;  %735 = vset.pattern.permute.xlu1 %v741_v1  ;;  %734 = vset.pattern.permute.xlu0 %v741_v1 }
   0x5   :  { %v135_v14 = vsel %vm53_vm0, %v48_v12, 0.0  ;;  %v111_v15 = vsel %vm53_vm0, %v40_v13, 0.0  ;;  %v49_v16 = vld [vmem:[%s1037_s0 + $0x38] sm:$0x3]  ;;  %v41_v17 = vld [vmem:[%s1037_s0 + $0x28] sm:$0x3] }
   0x6   :  { %v138_v18 = vsel %vm53_vm0, %v49_v16, 0.0  ;;  %v114_v19 = vsel %vm53_vm0, %v41_v17, 0.0  ;;  %v22_v20 = vld [vmem:[%s1037_s0 + $0x2] sm:$0x3]  ;;  %v21_v21 = vld [vmem:[%s1037_s0] sm:$0x3] }
   0x7   :  { %130 = vadd.xlane.f32.xlu1 %v129_v6  ;;  %106 = vadd.xlane.f32.xlu0 %v105_v7  ;;  %v57_v22 = vsel %vm53_vm0, %v22_v20, 0.0  ;;  %v54_v23 = vsel %vm53_vm0, %v21_v21, 0.0  ;;  %v30_v24 = vld [vmem:[%s1037_s0 + $0x12] sm:$0x3]  ;;  %v29_v25 = vld [vmem:[%s1037_s0 + $0x10] sm:$0x3] }
   0x8   :  { %v81_v26 = vsel %vm53_vm0, %v30_v24, 0.0  ;;  %v78_v27 = vsel %vm53_vm0, %v29_v25, 0.0  ;;  %v50_v28 = vld [vmem:[%s1037_s0 + $0x3a] sm:$0x3]  ;;  %v42_v29 = vld [vmem:[%s1037_s0 + $0x2a] sm:$0x3]  ;;  %v355_v24 = vlaneseq }
   0x9   :  { %v141_v30 = vsel %vm53_vm0, %v50_v28, 0.0  ;;  %v117_v31 = vsel %vm53_vm0, %v42_v29, 0.0  ;;  %v31_v32 = vld [vmem:[%s1037_s0 + $0x14] sm:$0x3]  ;;  %v23_v33 = vld [vmem:[%s1037_s0 + $0x4] sm:$0x3] }
   0xa   :  { %v84_v34 = vsel %vm53_vm0, %v31_v32, 0.0  ;;  %v60_v35 = vsel %vm53_vm0, %v23_v33, 0.0  ;;  %v51_v36 = vld [vmem:[%s1037_s0 + $0x3c] sm:$0x3]  ;;  %v43_v37 = vld [vmem:[%s1037_s0 + $0x2c] sm:$0x3] }
   0xb   :  { %133 = vadd.xlane.f32.xlu1 %v132_v10  ;;  %109 = vadd.xlane.f32.xlu0 %v108_v11  ;;  %v144_v38 = vsel %vm53_vm0, %v51_v36, 0.0  ;;  %v120_v39 = vsel %vm53_vm0, %v43_v37, 0.0  ;;  %v32_v40 = vld [vmem:[%s1037_s0 + $0x16] sm:$0x3]  ;;  %v24_v41 = vld [vmem:[%s1037_s0 + $0x6] sm:$0x3] }
   0xc   :  { %v87_v42 = vsel %vm53_vm0, %v32_v40, 0.0  ;;  %v63_v43 = vsel %vm53_vm0, %v24_v41, 0.0  ;;  %v52_v44 = vld [vmem:[%s1037_s0 + $0x3e] sm:$0x3]  ;;  %v44_v45 = vld [vmem:[%s1037_s0 + $0x2e] sm:$0x3] }
   0xd   :  { %v147_v46 = vsel %vm53_vm0, %v52_v44, 0.0  ;;  %v123_v47 = vsel %vm53_vm0, %v44_v45, 0.0  ;;  %v33_v48 = vld [vmem:[%s1037_s0 + $0x18] sm:$0x3]  ;;  %v25_v49 = vld [vmem:[%s1037_s0 + $0x8] sm:$0x3] }
   0xe   :  { %v90_v50 = vsel %vm53_vm0, %v33_v48, 0.0  ;;  %v66_v51 = vsel %vm53_vm0, %v25_v49, 0.0  ;;  %v34_v52 = vld [vmem:[%s1037_s0 + $0x1a] sm:$0x3]  ;;  %v26_v53 = vld [vmem:[%s1037_s0 + $0xa] sm:$0x3] }
   0xf   :  { %136 = vadd.xlane.f32.xlu1 %v135_v14  ;;  %112 = vadd.xlane.f32.xlu0 %v111_v15  ;;  %v93_v54 = vsel %vm53_vm0, %v34_v52, 0.0  ;;  %v69_v55 = vsel %vm53_vm0, %v26_v53, 0.0  ;;  %v35_v56 = vld [vmem:[%s1037_s0 + $0x1c] sm:$0x3]  ;;  %v27_v57 = vld [vmem:[%s1037_s0 + $0xc] sm:$0x3] }
  0x10   :  { %v96_v58 = vsel %vm53_vm0, %v35_v56, 0.0  ;;  %v72_v59 = vsel %vm53_vm0, %v27_v57, 0.0  ;;  %v36_v60 = vld [vmem:[%s1037_s0 + $0x1e] sm:$0x3]  ;;  %v28_v61 = vld [vmem:[%s1037_s0 + $0xe] sm:$0x3] }
  0x11   :  { %v99_v62 = vsel %vm53_vm0, %v36_v60, 0.0  ;;  %v75_v63 = vsel %vm53_vm0, %v28_v61, 0.0  ;;  %v736_v0 = vld [vmem:[%s1038_s1] sm:$0xff]   ;;  %v229_v4 = vld [vmem:[%s1039_s2 + $0x30] sm:$0xff]  ;;  %v617_v5 = vld [vmem:[%s1040_s4 + $0x8] sm:$0x3] }
  0x12   :  { %711 = vmatprep.mubr.msk.bf16.mxu0 %vm524_vm1, %v736_v0  ;;  %v227_v3 = vld [vmem:[%s1039_s2 + $0x20] sm:$0xff]  ;;  %v228_v6 = vld [vmem:[%s1039_s2 + $0x28] sm:$0xff]  ;;  %v225_v7 = vld [vmem:[%s1039_s2 + $0x10] sm:$0xff]  ;;  %v356_v33 = vand.u32 127, %v355_v24  ;;  %vm489_vm4 = vcmask 1043459   ;;  %vm491_vm5 = vcmask 1044484  }
  0x13   :  { %139 = vadd.xlane.f32.xlu1 %v138_v18  ;;  %115 = vadd.xlane.f32.xlu0 %v114_v19  ;;  %v226_v8 = vld [vmem:[%s1039_s2 + $0x18] sm:$0xff]  ;;  %v223_v9 = vld [vmem:[%s1039_s2] sm:$0xff]  ;;  %v224_v10 = vld [vmem:[%s1039_s2 + $0x8] sm:$0xff]  ;;  %vm493_vm6 = vcmask 1045509   ;;  %vm495_vm7 = vcmask 1046534   ;;  %vm497_vm8 = vcmask 1047559  }
  0x14   :  { %v616_v11 = vld [vmem:[%s1040_s4] sm:$0xff]  ;;  %vm743_vm9 = vmmov 0   ;;  %vm633_vm10 = vcmask 523264   ;;  %vm678_vm11 = vcmask 15360   ;;  %vm680_vm12 = vcmask 9216  }
  0x17   :  { %58 = vadd.xlane.f32.xlu1 %v57_v22  ;;  %55 = vadd.xlane.f32.xlu0 %v54_v23 }
  0x1b   :  { %82 = vadd.xlane.f32.xlu1 %v81_v26  ;;  %79 = vadd.xlane.f32.xlu0 %v78_v27 }
  0x1f   :  { %142 = vadd.xlane.f32.xlu1 %v141_v30  ;;  %118 = vadd.xlane.f32.xlu0 %v117_v31 }
  0x23   :  { %85 = vadd.xlane.f32.xlu1 %v84_v34  ;;  %61 = vadd.xlane.f32.xlu0 %v60_v35  ;;  %v358_v34 = vshrl.u32 %v355_v24, 7 }
  0x27   :  { %145 = vadd.xlane.f32.xlu1 %v144_v38  ;;  %121 = vadd.xlane.f32.xlu0 %v120_v39 }
  0x2b   :  { %88 = vadd.xlane.f32.xlu1 %v87_v42  ;;  %64 = vadd.xlane.f32.xlu0 %v63_v43 }
  0x2f   :  { %148 = vadd.xlane.f32.xlu1 %v147_v46  ;;  %124 = vadd.xlane.f32.xlu0 %v123_v47  ;;  %v940_v47 = vsub.s32 %v356_v33, %v358_v34 }
  0x33   :  { %91 = vadd.xlane.f32.xlu1 %v90_v50  ;;  %67 = vadd.xlane.f32.xlu0 %v66_v51 }
  0x37   :  { %94 = vadd.xlane.f32.xlu1 %v93_v54  ;;  %70 = vadd.xlane.f32.xlu0 %v69_v55 }
  0x3b   :  { %97 = vadd.xlane.f32.xlu1 %v96_v58  ;;  %73 = vadd.xlane.f32.xlu0 %v72_v59 }
  0x3f   :  { %100 = vadd.xlane.f32.xlu1 %v99_v62  ;;  %76 = vadd.xlane.f32.xlu0 %v75_v63 }
  0x50   :  { %268 = vperm.xlu1 %735, %v230_v2  }
  0x54   :  { %253 = vperm.xlu1 %735, %v227_v3  }
  0x55   :  { %263 = vperm.xlu0 %734, %v229_v4  }
  0x58   :  { %258 = vperm.xlu1 %735, %v228_v6  }
  0x59   :  { %625 = vperm.xlu0 %734, %v617_v5  }
  0x5c   :  { %243 = vperm.xlu1 %735, %v225_v7  }
  0x60   :  { %248 = vperm.xlu1 %735, %v226_v8  }
  0x64   :  { %233 = vperm.xlu1 %735, %v223_v9  }
  0x68   :  { %238 = vperm.xlu1 %735, %v224_v10  }
  0x6c   :  { %620 = vperm.xlu1 %735, %v616_v11  }
  0x8c   :  { %v128_v12 = vpop.xlane.xlu1 %127  ;;  %v104_v13 = vpop.xlane.xlu0 %103 }
  0x8d   :  { %v175_v25 = vmul.f32 0.015625, %v128_v12  ;;  %v167_v26 = vmul.f32 0.015625, %v104_v13 }
  0x8f   :  { %v215_v35 = vpack.c.bf16 %v175_v25, %v175_v25  ;;  %v207_v36 = vpack.c.bf16 %v167_v26, %v167_v26 }
  0x90   :  { %v131_v14 = vpop.xlane.xlu1 %130  ;;  %v107_v15 = vpop.xlane.xlu0 %106 }
  0x91   :  { %v176_v27 = vmul.f32 0.015625, %v131_v14  ;;  %v168_v28 = vmul.f32 0.015625, %v107_v15  ;;  %v347_v48 = vunpack.c.l.b16 %v215_v35  ;;  %v339_v49 = vunpack.c.l.b16 %v207_v36 }
  0x93   :  { %v216_v37 = vpack.c.bf16 %v176_v27, %v176_v27  ;;  %v208_v38 = vpack.c.bf16 %v168_v28, %v168_v28  ;;  %v456_v60 = vrot.slane %v347_v48, %v940_v47  ;;  %v424_v61 = vrot.slane %v339_v49, %v940_v47 }
  0x94   :  { %v134_v16 = vpop.xlane.xlu1 %133  ;;  %v110_v17 = vpop.xlane.xlu0 %109 }
  0x95   :  { %v177_v31 = vmul.f32 0.015625, %v134_v16  ;;  %v169_v32 = vmul.f32 0.015625, %v110_v17  ;;  %v348_v50 = vunpack.c.l.b16 %v216_v37  ;;  %v340_v51 = vunpack.c.l.b16 %v208_v38 }
  0x97   :  { %v217_v45 = vpack.c.bf16 %v177_v31, %v177_v31  ;;  %v209_v46 = vpack.c.bf16 %v169_v32, %v169_v32  ;;  %v460_v0 = vrot.slane %v348_v50, %v940_v47  ;;  %v428_v1 = vrot.slane %v340_v51, %v940_v47 }
  0x98   :  { %v137_v18 = vpop.xlane.xlu1 %136  ;;  %v113_v19 = vpop.xlane.xlu0 %112 }
  0x99   :  { %v178_v39 = vmul.f32 0.015625, %v137_v18  ;;  %v170_v40 = vmul.f32 0.015625, %v113_v19  ;;  %v349_v58 = vunpack.c.l.b16 %v217_v45  ;;  %v341_v59 = vunpack.c.l.b16 %v209_v46 }
  0x9a   :  { %v513_v16 = vsel %vm485_vm2, %v460_v0, %v456_v60  ;;  %v506_v17 = vsel %vm485_vm2, %v428_v1, %v424_v61 }
  0x9b   :  { %v218_v52 = vpack.c.bf16 %v178_v39, %v178_v39  ;;  %v210_v53 = vpack.c.bf16 %v170_v40, %v170_v40  ;;  %v464_v10 = vrot.slane %v349_v58, %v940_v47  ;;  %v432_v11 = vrot.slane %v341_v59, %v940_v47 }
  0x9c   :  { %v140_v20 = vpop.xlane.xlu1 %139  ;;  %v116_v21 = vpop.xlane.xlu0 %115 }
  0x9d   :  { %v179_v41 = vmul.f32 0.015625, %v140_v20  ;;  %v171_v42 = vmul.f32 0.015625, %v116_v21  ;;  %v350_v2 = vunpack.c.l.b16 %v218_v52  ;;  %v342_v3 = vunpack.c.l.b16 %v210_v53 }
  0x9e   :  { %v514_v26 = vsel %vm487_vm3, %v464_v10, %v513_v16  ;;  %v507_v27 = vsel %vm487_vm3, %v432_v11, %v506_v17 }
  0x9f   :  { %v219_v54 = vpack.c.bf16 %v179_v41, %v179_v41  ;;  %v211_v55 = vpack.c.bf16 %v171_v42, %v171_v42  ;;  %v468_v18 = vrot.slane %v350_v2, %v940_v47  ;;  %v436_v19 = vrot.slane %v342_v3, %v940_v47 }
  0xa0   :  { %v59_v22 = vpop.xlane.xlu1 %58  ;;  %v56_v23 = vpop.xlane.xlu0 %55 }
  0xa1   :  { %v152_v62 = vmul.f32 0.015625, %v59_v22  ;;  %v151_v63 = vmul.f32 0.015625, %v56_v23  ;;  %v351_v4 = vunpack.c.l.b16 %v219_v54  ;;  %v343_v5 = vunpack.c.l.b16 %v211_v55 }
  0xa2   :  { %v515_v36 = vsel %vm489_vm4, %v468_v18, %v514_v26  ;;  %v508_v37 = vsel %vm489_vm4, %v436_v19, %v507_v27 }
  0xa3   :  { %v192_v14 = vpack.c.bf16 %v152_v62, %v152_v62  ;;  %v191_v15 = vpack.c.bf16 %v151_v63, %v151_v63  ;;  %v472_v20 = vrot.slane %v351_v4, %v940_v47  ;;  %v440_v21 = vrot.slane %v343_v5, %v940_v47 }
  0xa4   :  { %v936_v29 = vpop.xlane.xlu1 %82  ;;  %v938_v30 = vpop.xlane.xlu0 %79 }
  0xa5   :  { %v960_v32 = vunpack.c.l.b16 %v192_v14  ;;  %v962_v33 = vunpack.c.l.b16 %v191_v15  ;;  %v160_v34 = vmul.f32 0.015625, %v936_v29  ;;  %v159_v35 = vmul.f32 0.015625, %v938_v30 }
  0xa6   :  { %v516_v38 = vsel %vm491_vm5, %v472_v20, %v515_v36  ;;  %v509_v39 = vsel %vm491_vm5, %v440_v21, %v508_v37 }
  0xa7   :  { %v364_v30 = vrot.slane %v960_v32, %v940_v47  ;;  %v360_v48 = vrot.slane %v962_v33, %v940_v47  ;;  %v200_v49 = vpack.c.bf16 %v160_v34, %v160_v34  ;;  %v199_v50 = vpack.c.bf16 %v159_v35, %v159_v35 }
  0xa8   :  { %v143_v43 = vpop.xlane.xlu1 %142  ;;  %v119_v44 = vpop.xlane.xlu0 %118 }
  0xa9   :  { %v180_v6 = vmul.f32 0.015625, %v143_v43  ;;  %v172_v7 = vmul.f32 0.015625, %v119_v44  ;;  %v332_v3 = vunpack.c.l.b16 %v200_v49 }
  0xab   :  { %v220_v22 = vpack.c.bf16 %v180_v6, %v180_v6  ;;  %v212_v23 = vpack.c.bf16 %v172_v7, %v172_v7 }
  0xac   :  { %v942_v56 = vpop.xlane.xlu1 %85  ;;  %v944_v57 = vpop.xlane.xlu0 %61 }
  0xad   :  { %v352_v40 = vunpack.c.l.b16 %v220_v22  ;;  %v344_v41 = vunpack.c.l.b16 %v212_v23  ;;  %v161_v51 = vmul.f32 0.015625, %v942_v56  ;;  %v153_v52 = vmul.f32 0.015625, %v944_v57 }
  0xae   :  { %v331_v56 = vunpack.c.l.b16 %v199_v50  ;;  %v396_v23 = vrot.slane %v332_v3, %v940_v47 }
  0xaf   :  { %v476_v55 = vrot.slane %v352_v40, %v940_v47  ;;  %v444_v58 = vrot.slane %v344_v41, %v940_v47  ;;  %v201_v5 = vpack.c.bf16 %v161_v51, %v161_v51  ;;  %v193_v6 = vpack.c.bf16 %v153_v52, %v153_v52 }
  0xb0   :  { %v146_v8 = vpop.xlane.xlu1 %145  ;;  %v122_v9 = vpop.xlane.xlu0 %121  ;;  %v486_v40 = vsel %vm485_vm2, %v364_v30, %v360_v48 }
  0xb1   :  { %v181_v12 = vmul.f32 0.015625, %v146_v8  ;;  %v173_v13 = vmul.f32 0.015625, %v122_v9  ;;  %v517_v14 = vsel %vm493_vm6, %v476_v55, %v516_v38  ;;  %v333_v27 = vunpack.c.l.b16 %v201_v5 }
  0xb3   :  { %v221_v28 = vpack.c.bf16 %v181_v12, %v181_v12  ;;  %v213_v31 = vpack.c.bf16 %v173_v13, %v173_v13  ;;  %v510_v13 = vsel %vm493_vm6, %v444_v58, %v509_v39 }
  0xb4   :  { %v89_v24 = vpop.xlane.xlu1 %88  ;;  %v65_v25 = vpop.xlane.xlu0 %64 }
  0xb5   :  { %v353_v44 = vunpack.c.l.b16 %v221_v28  ;;  %v345_v45 = vunpack.c.l.b16 %v213_v31  ;;  %v162_v59 = vmul.f32 0.015625, %v89_v24  ;;  %v154_v60 = vmul.f32 0.015625, %v65_v25 }
  0xb6   :  { %v392_v24 = vrot.slane %v331_v56, %v940_v47  ;;  %v325_v28 = vunpack.c.l.b16 %v193_v6 }
  0xb7   :  { %v480_v63 = vrot.slane %v353_v44, %v940_v47  ;;  %v448_v0 = vrot.slane %v345_v45, %v940_v47  ;;  %v202_v9 = vpack.c.bf16 %v162_v59, %v162_v59  ;;  %v194_v10 = vpack.c.bf16 %v154_v60, %v154_v60 }
  0xb8   :  { %v149_v42 = vpop.xlane.xlu1 %148  ;;  %v125_v43 = vpop.xlane.xlu0 %124  ;;  %v499_v41 = vsel %vm485_vm2, %v396_v23, %v392_v24  ;;  %v400_v44 = vrot.slane %v333_v27, %v940_v47  ;;  %v368_v45 = vrot.slane %v325_v28, %v940_v47 }
  0xb9   :  { %v182_v46 = vmul.f32 0.015625, %v149_v42  ;;  %v174_v29 = vmul.f32 0.015625, %v125_v43  ;;  %v511_v17 = vsel %vm495_vm7, %v448_v0, %v510_v13  ;;  %v518_v18 = vsel %vm495_vm7, %v480_v63, %v517_v14 }
  0xba   :  { %v334_v34 = vunpack.c.l.b16 %v202_v9  ;;  %v326_v35 = vunpack.c.l.b16 %v194_v10  ;;  %v500_v63 = vsel %vm487_vm3, %v400_v44, %v499_v41  ;;  %v488_v0 = vsel %vm487_vm3, %v368_v45, %v486_v40 }
  0xbb   :  { %v222_v53 = vpack.c.bf16 %v182_v46, %v182_v46  ;;  %v214_v54 = vpack.c.bf16 %v174_v29, %v174_v29 }
  0xbc   :  { %v92_v61 = vpop.xlane.xlu1 %91  ;;  %v68_v62 = vpop.xlane.xlu0 %67  ;;  %v404_v51 = vrot.slane %v334_v34, %v940_v47  ;;  %v372_v52 = vrot.slane %v326_v35, %v940_v47 }
  0xbd   :  { %v354_v1 = vunpack.c.l.b16 %v222_v53  ;;  %v346_v2 = vunpack.c.l.b16 %v214_v54  ;;  %v163_v4 = vmul.f32 0.015625, %v92_v61  ;;  %v155_v57 = vmul.f32 0.015625, %v68_v62 }
  0xbe   :  { %v501_v3 = vsel %vm489_vm4, %v404_v51, %v500_v63  ;;  %v490_v56 = vsel %vm489_vm4, %v372_v52, %v488_v0 }
  0xbf   :  { %v484_v7 = vrot.slane %v354_v1, %v940_v47  ;;  %v452_v8 = vrot.slane %v346_v2, %v940_v47  ;;  %v203_v19 = vpack.c.bf16 %v163_v4, %v163_v4  ;;  %v195_v20 = vpack.c.bf16 %v155_v57, %v155_v57 }
  0xc0   :  { %v95_v11 = vpop.xlane.xlu1 %94  ;;  %v71_v12 = vpop.xlane.xlu0 %70 }
  0xc1   :  { %v164_v15 = vmul.f32 0.015625, %v95_v11  ;;  %v156_v16 = vmul.f32 0.015625, %v71_v12  ;;  %v512_v21 = vsel %vm497_vm8, %v452_v8, %v511_v17  ;;  %v519_v22 = vsel %vm497_vm8, %v484_v7, %v518_v18  ;;  %v738_v17 = vld [vmem:[%s1038_s1 + $0x10] sm:$0xff]  }
  0xc2   :  { %v521_v32 = vpack.c.b16 %v519_v22, %v512_v21  ;;  %v335_v36 = vunpack.c.l.b16 %v203_v19  ;;  %v327_v37 = vunpack.c.l.b16 %v195_v20  ;;  %v742_v18 = vmov 0.0  }
  0xc3   :  { %v204_v25 = vpack.c.bf16 %v164_v15, %v164_v15  ;;  %v196_v26 = vpack.c.bf16 %v156_v16, %v156_v16  ;;  %v737_v16 = vld [vmem:[%s1038_s1 + $0x8] sm:$0xff]   ;;  %719 = vmatprep.subr.bf16.mxu1 %v742_v18  ;;  %727 = vmatprep.mubr.msk.bf16.mxu1 %vm743_vm9, %v742_v18 }
  0xc4   :  { %v98_v31 = vpop.xlane.xlu1 %97  ;;  %v74_v33 = vpop.xlane.xlu0 %73  ;;  %707 = vmatprep.subr.bf16.mxu0 %v521_v32  ;;  %v408_v30 = vrot.slane %v335_v36, %v940_v47  ;;  %v376_v48 = vrot.slane %v327_v37, %v940_v47 }
  0xc5   :  { %v165_v38 = vmul.f32 0.015625, %v98_v31  ;;  %v157_v39 = vmul.f32 0.015625, %v74_v33  ;;  %v336_v42 = vunpack.c.l.b16 %v204_v25  ;;  %v328_v43 = vunpack.c.l.b16 %v196_v26  ;;  %708 = vmatpush3.bf16.msra.mxu0 %v521_v32 }
  0xc6   :  { %v502_v5 = vsel %vm491_vm5, %v408_v30, %v501_v3  ;;  %v492_v6 = vsel %vm491_vm5, %v376_v48, %v490_v56 }
  0xc7   :  { %v205_v46 = vpack.c.bf16 %v165_v38, %v165_v38  ;;  %v197_v29 = vpack.c.bf16 %v157_v39, %v157_v39  ;;  %v412_v59 = vrot.slane %v336_v42, %v940_v47  ;;  %v380_v60 = vrot.slane %v328_v43, %v940_v47 }
  0xc8   :  { %v101_v49 = vpop.xlane.xlu1 %100  ;;  %v77_v50 = vpop.xlane.xlu0 %76 }
  0xc9   :  { %v166_v53 = vmul.f32 0.015625, %v101_v49  ;;  %v158_v54 = vmul.f32 0.015625, %v77_v50  ;;  %v337_v55 = vunpack.c.l.b16 %v205_v46  ;;  %v329_v58 = vunpack.c.l.b16 %v197_v29 }
  0xca   :  { %v503_v7 = vsel %vm493_vm6, %v412_v59, %v502_v5  ;;  %v494_v8 = vsel %vm493_vm6, %v380_v60, %v492_v6 }
  0xcb   :  { %v206_v61 = vpack.c.bf16 %v166_v53, %v166_v53  ;;  %v198_v62 = vpack.c.bf16 %v158_v54, %v158_v54  ;;  %v416_v1 = vrot.slane %v337_v55, %v940_v47  ;;  %v384_v2 = vrot.slane %v329_v58, %v940_v47  ;;  %v740_v58 = vld [vmem:[%s1041_s3] sm:$0x1f]  }
  0xcc   :  { %v269_v19 = vpop.permute.xlu1 %268 }
  0xcd   :  { %v338_v4 = vunpack.c.l.b16 %v206_v61  ;;  %v330_v57 = vunpack.c.l.b16 %v198_v62  ;;  %v496_v11 = vsel %vm495_vm7, %v384_v2, %v494_v8  ;;  %v504_v12 = vsel %vm495_vm7, %v416_v1, %v503_v7 }
  0xcf   :  { %v420_v9 = vrot.slane %v338_v4, %v940_v47  ;;  %v388_v10 = vrot.slane %v330_v57, %v940_v47  ;;  %v739_v47 = vld [vmem:[%s1038_s1 + $0x18] sm:$0xff]  }
  0xd0   :  { %v254_v20 = vpop.permute.xlu1 %253  ;;  %v264_v31 = vpop.permute.xlu0 %263 }
  0xd1   :  { %v498_v13 = vsel %vm497_vm8, %v388_v10, %v496_v11  ;;  %v505_v14 = vsel %vm497_vm8, %v420_v9, %v504_v12 }
  0xd2   :  { %v520_v15 = vpack.c.b16 %v505_v14, %v498_v13 }
  0xd4   :  { %709 = vmatprep.subr.bf16.mxu0 %v520_v15  ;;  %v259_v21 = vpop.permute.xlu1 %258  ;;  %v626_v63 = vpop.permute.xlu0 %625 }
  0xd5   :  { %710 = vmatpush3.bf16.msra.mxu0 %v520_v15 }
  0xd8   :  { %712 = vmatmul.mubr.msk.bf16.vlgmr.msra.gmra.mxu0 %vm524_vm1, %v737_v16  ;;  %v244_v23 = vpop.permute.xlu1 %243 }
  0xd9   :  { %715 = vmatprep.mubr.msk.bf16.mxu0 %vm524_vm1, %v738_v17 }
  0xdc   :  { %v249_v27 = vpop.permute.xlu1 %248 }
  0xe0   :  { %716 = vmatmul.mubr.msk.bf16.gmra.mxu0 %vm524_vm1, %v739_v47  ;;  %v234_v36 = vpop.permute.xlu1 %233 }
  0xe4   :  { %v239_v29 = vpop.permute.xlu1 %238 }
  0xe8   :  { %v621_v59 = vpop.permute.xlu1 %620 }
 0x198   :  { %v713_v22 = vpop.f32.mrf.mxu0 }
 0x199   :  { %v580_v45 = vadd.f32 %v713_v22, %v244_v23 }
 0x19a   :  { %v571_v24 = vpop.f32.mrf.mxu0 }
 0x19b   :  { %v604_v52 = vmax.f32 %v580_v45, 0.0  ;;  %v572_v53 = vadd.f32 %v571_v24, %v234_v36 }
 0x19c   :  { %v714_v25 = vpop.f32.mrf.mxu0 }
 0x19d   :  { %v583_v42 = vadd.f32 %v714_v25, %v249_v27  ;;  %v602_v48 = vmax.f32 %v572_v53, 0.0 }
 0x19e   :  { %v574_v26 = vpop.f32.mrf.mxu0 }
 0x19f   :  { %v605_v49 = vmax.f32 %v583_v42, 0.0  ;;  %v575_v50 = vadd.f32 %v574_v26, %v239_v29 }
 0x1a0   :  { %v717_v28 = vpop.f32.mrf.mxu0 }
 0x1a1   :  { %v596_v33 = vadd.f32 %v717_v28, %v264_v31  ;;  %v613_v54 = vpack.c.bf16 %v605_v49, %v604_v52  ;;  %v603_v30 = vmax.f32 %v575_v50, 0.0 }
 0x1a2   :  { %v587_v32 = vpop.f32.mrf.mxu0 }
 0x1a3   :  { %v608_v38 = vmax.f32 %v596_v33, 0.0  ;;  %v588_v39 = vadd.f32 %v587_v32, %v254_v20  ;;  %v612_v55 = vpack.c.bf16 %v603_v30, %v602_v48 }
 0x1a4   :  { %v718_v34 = vpop.f32.mrf.mxu0 }
 0x1a5   :  { %v599_v35 = vadd.f32 %v718_v34, %v269_v19  ;;  %v606_v46 = vmax.f32 %v588_v39, 0.0 }
 0x1a6   :  { %v590_v37 = vpop.f32.mrf.mxu0 }
 0x1a7   :  { %v609_v40 = vmax.f32 %v599_v35, 0.0  ;;  %v591_v41 = vadd.f32 %v590_v37, %v259_v21 }
 0x1a9   :  { %v607_v43 = vmax.f32 %v591_v41, 0.0  ;;  %v615_v44 = vpack.c.bf16 %v609_v40, %v608_v38 }
 0x1ab   :  { %720 = vmatpush3.bf16.msra.mxu1 %v615_v44  ;;  %v614_v51 = vpack.c.bf16 %v607_v43, %v606_v46 }
 0x1ac   :  { %721 = vmatprep.subr.bf16.mxu1 %v742_v18 }
 0x1af   :  { %722 = vmatpush3.bf16.msra.mxu1 %v614_v51 }
 0x1b0   :  { %723 = vmatprep.subr.bf16.mxu1 %v742_v18 }
 0x1b3   :  { %724 = vmatpush3.bf16.msra.mxu1 %v613_v54 }
 0x1b4   :  { %725 = vmatprep.subr.bf16.mxu1 %v742_v18 }
 0x1b7   :  { %726 = vmatpush3.bf16.msra.mxu1 %v612_v55 }
 0x1ba   :  { %728 = vmatmul.mubr.msk.bf16.vlgmr.msra.gmra.mxu1 %vm633_vm10, %v740_v58 }
 0x27a   :  { %v671_v60 = vpop.f32.mrf.mxu1 }
 0x27b   :  { %v672_v61 = vadd.f32 %v671_v60, %v621_v59 }
 0x27c   :  { %v729_v62 = vpop.f32.mrf.mxu1 }
 0x27d   :  { %679 = vst.msk [vmem:[%s1042_s5] sm:$0xff] %vm678_vm11, %v672_v61 }
 0x27e   :  { %v674_v0 = vpop.f32.mrf.mxu1 }
 0x27f   :  { %v675_v1 = vadd.f32 %v674_v0, %v626_v63 }
 0x280   :  { %v730_v2 = vpop.f32.mrf.mxu1 }
 0x281   :  { %681 = vst.msk [vmem:[%s1042_s5 + $0x8] sm:$0x3] %vm680_vm12, %v675_v1 }

</bundles_post_ra>
